<compile_context>
chip_gen: v7x
topology: tpu7x:2x2x1
jax: 0.10.0
libtpu: 0.0.40
codegen_flags: <defaults>
</compile_context>

<pallas_src>
import functools

import jax
import jax.numpy as jnp
from jax.experimental import pallas as pl
from jax.experimental.pallas import tpu as pltpu

# bf16 weights, f32 accumulation (preferred_element_type) on every TPU gen.
WEIGHT_DTYPE = jnp.bfloat16


# ----------------------------------------------------------------------------
# The single fused kernel: whole CVAE forward, all activations VMEM-resident.
# ----------------------------------------------------------------------------
def _cvae_fused_kernel(x_ref, eps_ref,
                       w_enc1, w_enc2, w_mu, w_sig, w_din, w_dec1, w_fin,
                       b_ref,
                       out_ref, z_ref, mu_ref, sigma_ref):
    f32 = jnp.float32

    def dense(h, w_r, layer_idx):
        # one lane-dense MXU matmul per layer: bf16 operands, f32 accumulation
        n_out = w_r.shape[1]
        acc = jnp.dot(h.astype(w_r.dtype), w_r[...],
                      preferred_element_type=f32)
        return acc + b_ref[layer_idx:layer_idx + 1, :n_out]

    # ---- encode ----
    x = x_ref[...]
    h = jnp.maximum(dense(x, w_enc1, 0), 0.0)        # Conv3x3 s2 + ReLU
    h = jnp.maximum(dense(h, w_enc2, 1), 0.0)        # Conv3x3 s2 + ReLU
    mu = dense(h, w_mu, 2)                           # 1x1 conv (linear)
    sigma = jnp.exp(0.5 * dense(h, w_sig, 3))        # exp(0.5 * logvar)

    # ---- reparametrise (eps supplied by the wrapper, torch.randn_like) ----
    z = eps_ref[...] * sigma + mu

    # ---- decode ----
    d = dense(z, w_din, 4)                           # 1x1 conv (linear)
    d = jnp.maximum(dense(d, w_dec1, 5), 0.0)        # ConvT3x3 s2 + ReLU
    out = jnp.tanh(dense(d, w_fin, 6))               # 1x1 conv + Tanh

    out_ref[...] = out
    z_ref[...] = z
    mu_ref[...] = mu
    sigma_ref[...] = sigma


# ----------------------------------------------------------------------------
# Parameter packing (done once, off the hot path): fold each (transposed) conv
# into a dense matrix acting on channel-first-flattened activations, cast the
# matrices to bf16, and pack all biases into one f32 tile.
# ----------------------------------------------------------------------------
def _linearize_conv(w, b, in_cshape, *, stride=1, padding=0,
                    transposed=False, output_padding=0):
    cin, h_in, w_in = in_cshape
    n_in = cin * h_in * w_in
    basis = jnp.eye(n_in, dtype=jnp.float32).reshape(n_in, cin, h_in, w_in)
    if transposed:
        # torch ConvTranspose2d(W: (Cin,Cout,KH,KW)) == cross-correlation of the
        # lhs-dilated, edge-padded input with the spatially-flipped, IO-swapped W.
        k = w.shape[-1]
        w_eq = jnp.transpose(jnp.flip(w, axis=(-2, -1)), (1, 0, 2, 3))
        lo = k - 1 - padding
        hi = lo + output_padding
        y = jax.lax.conv_general_dilated(
            basis, w_eq, window_strides=(1, 1), padding=((lo, hi), (lo, hi)),
            lhs_dilation=(stride, stride),
            dimension_numbers=("NCHW", "OIHW", "NCHW"),
            precision=jax.lax.Precision.HIGHEST)
    else:
        y = jax.lax.conv_general_dilated(
            basis, w, window_strides=(stride, stride),
            padding=((padding, padding), (padding, padding)),
            dimension_numbers=("NCHW", "OIHW", "NCHW"),
            precision=jax.lax.Precision.HIGHEST)
    cout, ho, wo = y.shape[1], y.shape[2], y.shape[3]
    wd = y.reshape(n_in, cout * ho * wo).astype(jnp.float32)
    b_flat = jnp.repeat(b.astype(jnp.float32), ho * wo).reshape(1, cout * ho * wo)
    return (wd, b_flat), (cout, ho, wo)


def pack_cvae_params(params, in_cshape):
    mats = []
    shp = in_cshape
    m, shp = _linearize_conv(*params["enc1"], shp, stride=2, padding=1); mats.append(m)
    m, shp = _linearize_conv(*params["enc2"], shp, stride=2, padding=1); mats.append(m)
    enc_shp = shp
    m, lat_shp = _linearize_conv(*params["mu"], enc_shp); mats.append(m)
    m, _ = _linearize_conv(*params["sigma"], enc_shp); mats.append(m)
    m, shp = _linearize_conv(*params["din"], lat_shp); mats.append(m)
    m, shp = _linearize_conv(*params["dec1"], shp, stride=2, padding=1,
                             transposed=True, output_padding=1); mats.append(m)
    m, out_shp = _linearize_conv(*params["fin"], shp); mats.append(m)

    weights = tuple(wd.astype(WEIGHT_DTYPE) for wd, _ in mats)

    # pack all biases into one (8, max_out) f32 tile (sublane/lane aligned)
    max_out = max(wd.shape[1] for wd, _ in mats)
    max_out = ((max_out + 127) // 128) * 128
    n_rows = max(8, ((len(mats) + 7) // 8) * 8)
    bias_pack = jnp.zeros((n_rows, max_out), jnp.float32)
    for i, (_, bf) in enumerate(mats):
        bias_pack = bias_pack.at[i, :bf.shape[1]].set(bf[0])

    return weights, bias_pack, lat_shp, out_shp


# ----------------------------------------------------------------------------
# Forward wrapper: flatten (channel-first) -> one fused pallas_call -> reshape.
# ----------------------------------------------------------------------------
def cvae_forward(x_nchw, weights, bias_pack, key, *, lat_cshape, out_cshape,
                 return_all=True):
    n = x_nchw.shape[0]
    n_pad = max(8, ((n + 7) // 8) * 8)                 # sublane-align the row dim
    x_flat = x_nchw.reshape(n, -1).astype(jnp.float32)
    x_flat = jnp.pad(x_flat, ((0, n_pad - n), (0, 0)))

    n_lat = lat_cshape[0] * lat_cshape[1] * lat_cshape[2]
    n_out = out_cshape[0] * out_cshape[1] * out_cshape[2]

    # eps ~ N(0,1): drawn outside the kernel (== torch.randn_like); tiny tensor,
    # negligible HBM traffic, and it lowers on every backend / interpret mode.
    eps = jax.random.normal(key, (n_pad, n_lat), jnp.float32)

    tensor_args = [x_flat, eps, *weights, bias_pack]
    idx = lambda i: (0, 0)                             # whole-array blocks

    out_flat, z_flat, mu_flat, sig_flat = pl.pallas_call(
        _cvae_fused_kernel,
        grid=(1,),
        in_specs=[pl.BlockSpec(t.shape, idx) for t in tensor_args],
        out_specs=(
            pl.BlockSpec((n_pad, n_out), idx),
            pl.BlockSpec((n_pad, n_lat), idx),
            pl.BlockSpec((n_pad, n_lat), idx),
            pl.BlockSpec((n_pad, n_lat), idx),
        ),
        out_shape=(
            jax.ShapeDtypeStruct((n_pad, n_out), jnp.float32),
            jax.ShapeDtypeStruct((n_pad, n_lat), jnp.float32),
            jax.ShapeDtypeStruct((n_pad, n_lat), jnp.float32),
            jax.ShapeDtypeStruct((n_pad, n_lat), jnp.float32),
        ),
        compiler_params=pltpu.CompilerParams(
            dimension_semantics=("arbitrary",),
            vmem_limit_bytes=32 * 1024 * 1024),
    )(*tensor_args)

    out = out_flat[:n].reshape(n, *out_cshape)
    z = z_flat[:n].reshape(n, *lat_cshape)
    mu = mu_flat[:n].reshape(n, *lat_cshape)
    sigma = sig_flat[:n].reshape(n, *lat_cshape)
    if return_all:
        return out, x_nchw, z, mu, sigma
    return out


# ----------------------------------------------------------------------------
# Parameters (PyTorch conventions: OIHW for Conv2d, (Cin,Cout,KH,KW) for
# ConvTranspose2d), plus a pure-JAX lax-conv reference for verification.
# ----------------------------------------------------------------------------
def init_cvae_params(key, in_channels=4, latent_dim=8, encoder=(8, 16),
                     out_channels=None):
    out_channels = out_channels or in_channels
    decoder = list(encoder)[::-1]
    ks = jax.random.split(key, 7)

    def conv_w(k, cout, cin, kh, kw):
        kw_, kb_ = jax.random.split(k)
        w = 0.1 * jax.random.normal(kw_, (cout, cin, kh, kw), jnp.float32)
        bb = 0.01 * jax.random.normal(kb_, (cout,), jnp.float32)
        return w, bb

    def convT_w(k, cin, cout, kh, kw):
        kw_, kb_ = jax.random.split(k)
        w = 0.1 * jax.random.normal(kw_, (cin, cout, kh, kw), jnp.float32)
        bb = 0.01 * jax.random.normal(kb_, (cout,), jnp.float32)
        return w, bb

    p = {}
    p["enc1"] = conv_w(ks[0], encoder[0], in_channels, 3, 3)
    p["enc2"] = conv_w(ks[1], encoder[1], encoder[0], 3, 3)
    p["mu"] = conv_w(ks[2], latent_dim, encoder[-1], 1, 1)
    p["sigma"] = conv_w(ks[3], latent_dim, encoder[-1], 1, 1)
    p["din"] = conv_w(ks[4], decoder[0], latent_dim, 1, 1)
    p["dec1"] = convT_w(ks[5], decoder[0], decoder[1], 3, 3)
    p["fin"] = conv_w(ks[6], out_channels, decoder[-1], 1, 1)
    return p


def _conv_nchw(x, w, b, *, stride=1, padding=0):
    y = jax.lax.conv_general_dilated(
        x, w, window_strides=(stride, stride),
        padding=((padding, padding), (padding, padding)),
        dimension_numbers=("NCHW", "OIHW", "NCHW"),
        precision=jax.lax.Precision.HIGHEST)
    return y + b.reshape(1, -1, 1, 1)


def _conv_transpose_nchw(x, w, b, *, stride=2, padding=1, output_padding=1):
    k = w.shape[-1]
    w_eq = jnp.transpose(jnp.flip(w, axis=(-2, -1)), (1, 0, 2, 3))
    lo = k - 1 - padding
    hi = lo + output_padding
    y = jax.lax.conv_general_dilated(
        x, w_eq, window_strides=(1, 1), padding=((lo, hi), (lo, hi)),
        lhs_dilation=(stride, stride),
        dimension_numbers=("NCHW", "OIHW", "NCHW"),
        precision=jax.lax.Precision.HIGHEST)
    return y + b.reshape(1, -1, 1, 1)


def reference_encode(x, params):
    h = jnp.maximum(_conv_nchw(x, *params["enc1"], stride=2, padding=1), 0.0)
    h = jnp.maximum(_conv_nchw(h, *params["enc2"], stride=2, padding=1), 0.0)
    mu = _conv_nchw(h, *params["mu"])
    sigma = jnp.exp(0.5 * _conv_nchw(h, *params["sigma"]))
    return mu, sigma


def reference_decode(z, params):
    d = _conv_nchw(z, *params["din"])
    d = jnp.maximum(_conv_transpose_nchw(d, *params["dec1"]), 0.0)
    return jnp.tanh(_conv_nchw(d, *params["fin"]))


if __name__ == "__main__":
    key = jax.random.PRNGKey(0)
    k_param, k_x, k_eps = jax.random.split(key, 3)

    params = init_cvae_params(k_param, in_channels=4, latent_dim=8, encoder=(8, 16))
    weights, bias_pack, lat_cshape, out_cshape = pack_cvae_params(
        params, in_cshape=(4, 16, 16))

    x = jax.random.normal(k_x, (2, 4, 16, 16), jnp.float32)   # NCHW, like PyTorch

    fwd = jax.jit(functools.partial(cvae_forward, lat_cshape=lat_cshape,
                                    out_cshape=out_cshape, return_all=True))
    out, x_in, z, mu, sigma = fwd(x, weights, bias_pack, k_eps)
    jax.block_until_ready(out)
    jax.block_until_ready(z)

    # shape / sanity checks (mirrors the torch module's return_all tuple)
    assert out.shape == (2, 4, 8, 8)
    assert mu.shape == (2, 8, 4, 4) and sigma.shape == (2, 8, 4, 4) and z.shape == (2, 8, 4, 4)
    assert bool(jnp.all(jnp.isfinite(out))) and bool(jnp.all(sigma > 0.0))

    # numerical check of every linear layer against a plain lax-conv f32
    # reference (encode checked on x; decode checked on the kernel's own z);
    # tolerance accounts for the bf16 weight storage (f32 accumulation).
    mu_ref, sigma_ref = reference_encode(x, params)
    out_ref = reference_decode(z, params)
    tol = dict(atol=3e-2, rtol=3e-2)
    assert bool(jnp.allclose(mu, mu_ref, **tol))
    assert bool(jnp.allclose(sigma, sigma_ref, **tol))
    assert bool(jnp.allclose(out, out_ref, **tol))

    print("KERNEL_OK")
</pallas_src>

<mosaic_0001>
module attributes {stable_mosaic.version = 11 : i64} {
  func.func @_cvae_fused_kernel(%arg0: i32, %arg1: memref<8x1024xf32, #tpu.memory_space<vmem>>, %arg2: memref<8x128xf32, #tpu.memory_space<vmem>>, %arg3: memref<1024x512xbf16, #tpu.memory_space<vmem>>, %arg4: memref<512x256xbf16, #tpu.memory_space<vmem>>, %arg5: memref<256x128xbf16, #tpu.memory_space<vmem>>, %arg6: memref<256x128xbf16, #tpu.memory_space<vmem>>, %arg7: memref<128x256xbf16, #tpu.memory_space<vmem>>, %arg8: memref<256x512xbf16, #tpu.memory_space<vmem>>, %arg9: memref<512x256xbf16, #tpu.memory_space<vmem>>, %arg10: memref<8x512xf32, #tpu.memory_space<vmem>>, %arg11: memref<8x256xf32, #tpu.memory_space<vmem>>, %arg12: memref<8x128xf32, #tpu.memory_space<vmem>>, %arg13: memref<8x128xf32, #tpu.memory_space<vmem>>, %arg14: memref<8x128xf32, #tpu.memory_space<vmem>>) attributes {dimension_semantics = [#tpu.dimension_semantics<arbitrary>], iteration_bounds = array<i64: 1>, scalar_prefetch = 0 : i64, scratch_operands = 0 : i64, tpu.core_type = #tpu.core_type<tc>, window_params = [{pipeline_mode = #tpu.pipeline_mode<synchronous>, transform_indices = @transform_0, window_bounds = array<i64: 8, 1024>}, {pipeline_mode = #tpu.pipeline_mode<synchronous>, transform_indices = @transform_1, window_bounds = array<i64: 8, 128>}, {pipeline_mode = #tpu.pipeline_mode<synchronous>, transform_indices = @transform_2, window_bounds = array<i64: 1024, 512>}, {pipeline_mode = #tpu.pipeline_mode<synchronous>, transform_indices = @transform_3, window_bounds = array<i64: 512, 256>}, {pipeline_mode = #tpu.pipeline_mode<synchronous>, transform_indices = @transform_4, window_bounds = array<i64: 256, 128>}, {pipeline_mode = #tpu.pipeline_mode<synchronous>, transform_indices = @transform_5, window_bounds = array<i64: 256, 128>}, {pipeline_mode = #tpu.pipeline_mode<synchronous>, transform_indices = @transform_6, window_bounds = array<i64: 128, 256>}, {pipeline_mode = #tpu.pipeline_mode<synchronous>, transform_indices = @transform_7, window_bounds = array<i64: 256, 512>}, {pipeline_mode = #tpu.pipeline_mode<synchronous>, transform_indices = @transform_8, window_bounds = array<i64: 512, 256>}, {pipeline_mode = #tpu.pipeline_mode<synchronous>, transform_indices = @transform_9, window_bounds = array<i64: 8, 512>}, {pipeline_mode = #tpu.pipeline_mode<synchronous>, transform_indices = @transform_10, window_bounds = array<i64: 8, 256>}, {pipeline_mode = #tpu.pipeline_mode<synchronous>, transform_indices = @transform_11, window_bounds = array<i64: 8, 128>}, {pipeline_mode = #tpu.pipeline_mode<synchronous>, transform_indices = @transform_12, window_bounds = array<i64: 8, 128>}, {pipeline_mode = #tpu.pipeline_mode<synchronous>, transform_indices = @transform_13, window_bounds = array<i64: 8, 128>}]} {
    %c0 = arith.constant 0 : index
    %c0_0 = arith.constant 0 : index
    %0 = vector.load %arg1[%c0, %c0_0] : memref<8x1024xf32, #tpu.memory_space<vmem>>, vector<8x1024xf32>
    %1 = arith.truncf %0 : vector<8x1024xf32> to vector<8x1024xbf16>
    %c0_1 = arith.constant 0 : index
    %c0_2 = arith.constant 0 : index
    %2 = vector.load %arg3[%c0_1, %c0_2] : memref<1024x512xbf16, #tpu.memory_space<vmem>>, vector<1024x512xbf16>
    %cst = arith.constant dense<0.000000e+00> : vector<8x512xf32>
    %3 = tpu.matmul %1, %2, %cst {dimension_numbers = #tpu.dot_dimension_numbers<[1], [0], [0], [1], [0, 0, 1, 1], [], []>} : vector<8x1024xbf16>, vector<1024x512xbf16>, vector<8x512xf32> -> vector<8x512xf32>
    %c0_3 = arith.constant 0 : index
    %c0_4 = arith.constant 0 : index
    %4 = vector.load %arg10[%c0_3, %c0_4] : memref<8x512xf32, #tpu.memory_space<vmem>>, vector<1x512xf32>
    %5 = vector.broadcast %4 : vector<1x512xf32> to vector<8x512xf32>
    %6 = arith.addf %3, %5 : vector<8x512xf32>
    %cst_5 = arith.constant 0.000000e+00 : f32
    %7 = vector.broadcast %cst_5 : f32 to vector<8x512xf32>
    %8 = arith.maximumf %6, %7 : vector<8x512xf32>
    %9 = arith.truncf %8 : vector<8x512xf32> to vector<8x512xbf16>
    %c0_6 = arith.constant 0 : index
    %c0_7 = arith.constant 0 : index
    %10 = vector.load %arg4[%c0_6, %c0_7] : memref<512x256xbf16, #tpu.memory_space<vmem>>, vector<512x256xbf16>
    %cst_8 = arith.constant dense<0.000000e+00> : vector<8x256xf32>
    %11 = tpu.matmul %9, %10, %cst_8 {dimension_numbers = #tpu.dot_dimension_numbers<[1], [0], [0], [1], [0, 0, 1, 1], [], []>} : vector<8x512xbf16>, vector<512x256xbf16>, vector<8x256xf32> -> vector<8x256xf32>
    %c1 = arith.constant 1 : index
    %c0_9 = arith.constant 0 : index
    %12 = vector.load %arg10[%c1, %c0_9] : memref<8x512xf32, #tpu.memory_space<vmem>>, vector<1x256xf32>
    %13 = vector.broadcast %12 : vector<1x256xf32> to vector<8x256xf32>
    %14 = arith.addf %11, %13 : vector<8x256xf32>
    %cst_10 = arith.constant 0.000000e+00 : f32
    %15 = vector.broadcast %cst_10 : f32 to vector<8x256xf32>
    %16 = arith.maximumf %14, %15 : vector<8x256xf32>
    %17 = arith.truncf %16 : vector<8x256xf32> to vector<8x256xbf16>
    %c0_11 = arith.constant 0 : index
    %c0_12 = arith.constant 0 : index
    %18 = vector.load %arg5[%c0_11, %c0_12] : memref<256x128xbf16, #tpu.memory_space<vmem>>, vector<256x128xbf16>
    %cst_13 = arith.constant dense<0.000000e+00> : vector<8x128xf32>
    %19 = tpu.matmul %17, %18, %cst_13 {dimension_numbers = #tpu.dot_dimension_numbers<[1], [0], [0], [1], [0, 0, 1, 1], [], []>} : vector<8x256xbf16>, vector<256x128xbf16>, vector<8x128xf32> -> vector<8x128xf32>
    %c2 = arith.constant 2 : index
    %c0_14 = arith.constant 0 : index
    %20 = vector.load %arg10[%c2, %c0_14] : memref<8x512xf32, #tpu.memory_space<vmem>>, vector<1x128xf32>
    %21 = vector.broadcast %20 : vector<1x128xf32> to vector<8x128xf32>
    %22 = arith.addf %19, %21 : vector<8x128xf32>
    %23 = arith.truncf %16 : vector<8x256xf32> to vector<8x256xbf16>
    %c0_15 = arith.constant 0 : index
    %c0_16 = arith.constant 0 : index
    %24 = vector.load %arg6[%c0_15, %c0_16] : memref<256x128xbf16, #tpu.memory_space<vmem>>, vector<256x128xbf16>
    %cst_17 = arith.constant dense<0.000000e+00> : vector<8x128xf32>
    %25 = tpu.matmul %23, %24, %cst_17 {dimension_numbers = #tpu.dot_dimension_numbers<[1], [0], [0], [1], [0, 0, 1, 1], [], []>} : vector<8x256xbf16>, vector<256x128xbf16>, vector<8x128xf32> -> vector<8x128xf32>
    %c3 = arith.constant 3 : index
    %c0_18 = arith.constant 0 : index
    %26 = vector.load %arg10[%c3, %c0_18] : memref<8x512xf32, #tpu.memory_space<vmem>>, vector<1x128xf32>
    %27 = vector.broadcast %26 : vector<1x128xf32> to vector<8x128xf32>
    %28 = arith.addf %25, %27 : vector<8x128xf32>
    %cst_19 = arith.constant 5.000000e-01 : f32
    %29 = vector.broadcast %cst_19 : f32 to vector<8x128xf32>
    %30 = arith.mulf %29, %28 : vector<8x128xf32>
    %31 = math.exp %30 : vector<8x128xf32>
    %c0_20 = arith.constant 0 : index
    %c0_21 = arith.constant 0 : index
    %32 = vector.load %arg2[%c0_20, %c0_21] : memref<8x128xf32, #tpu.memory_space<vmem>>, vector<8x128xf32>
    %33 = arith.mulf %32, %31 : vector<8x128xf32>
    %34 = arith.addf %33, %22 : vector<8x128xf32>
    %35 = arith.truncf %34 : vector<8x128xf32> to vector<8x128xbf16>
    %c0_22 = arith.constant 0 : index
    %c0_23 = arith.constant 0 : index
    %36 = vector.load %arg7[%c0_22, %c0_23] : memref<128x256xbf16, #tpu.memory_space<vmem>>, vector<128x256xbf16>
    %cst_24 = arith.constant dense<0.000000e+00> : vector<8x256xf32>
    %37 = tpu.matmul %35, %36, %cst_24 {dimension_numbers = #tpu.dot_dimension_numbers<[1], [0], [0], [1], [0, 0, 1, 1], [], []>} : vector<8x128xbf16>, vector<128x256xbf16>, vector<8x256xf32> -> vector<8x256xf32>
    %c4 = arith.constant 4 : index
    %c0_25 = arith.constant 0 : index
    %38 = vector.load %arg10[%c4, %c0_25] : memref<8x512xf32, #tpu.memory_space<vmem>>, vector<1x256xf32>
    %39 = vector.broadcast %38 : vector<1x256xf32> to vector<8x256xf32>
    %40 = arith.addf %37, %39 : vector<8x256xf32>
    %41 = arith.truncf %40 : vector<8x256xf32> to vector<8x256xbf16>
    %c0_26 = arith.constant 0 : index
    %c0_27 = arith.constant 0 : index
    %42 = vector.load %arg8[%c0_26, %c0_27] : memref<256x512xbf16, #tpu.memory_space<vmem>>, vector<256x512xbf16>
    %cst_28 = arith.constant dense<0.000000e+00> : vector<8x512xf32>
    %43 = tpu.matmul %41, %42, %cst_28 {dimension_numbers = #tpu.dot_dimension_numbers<[1], [0], [0], [1], [0, 0, 1, 1], [], []>} : vector<8x256xbf16>, vector<256x512xbf16>, vector<8x512xf32> -> vector<8x512xf32>
    %c5 = arith.constant 5 : index
    %c0_29 = arith.constant 0 : index
    %44 = vector.load %arg10[%c5, %c0_29] : memref<8x512xf32, #tpu.memory_space<vmem>>, vector<1x512xf32>
    %45 = vector.broadcast %44 : vector<1x512xf32> to vector<8x512xf32>
    %46 = arith.addf %43, %45 : vector<8x512xf32>
    %cst_30 = arith.constant 0.000000e+00 : f32
    %47 = vector.broadcast %cst_30 : f32 to vector<8x512xf32>
    %48 = arith.maximumf %46, %47 : vector<8x512xf32>
    %49 = arith.truncf %48 : vector<8x512xf32> to vector<8x512xbf16>
    %c0_31 = arith.constant 0 : index
    %c0_32 = arith.constant 0 : index
    %50 = vector.load %arg9[%c0_31, %c0_32] : memref<512x256xbf16, #tpu.memory_space<vmem>>, vector<512x256xbf16>
    %cst_33 = arith.constant dense<0.000000e+00> : vector<8x256xf32>
    %51 = tpu.matmul %49, %50, %cst_33 {dimension_numbers = #tpu.dot_dimension_numbers<[1], [0], [0], [1], [0, 0, 1, 1], [], []>} : vector<8x512xbf16>, vector<512x256xbf16>, vector<8x256xf32> -> vector<8x256xf32>
    %c6 = arith.constant 6 : index
    %c0_34 = arith.constant 0 : index
    %52 = vector.load %arg10[%c6, %c0_34] : memref<8x512xf32, #tpu.memory_space<vmem>>, vector<1x256xf32>
    %53 = vector.broadcast %52 : vector<1x256xf32> to vector<8x256xf32>
    %54 = arith.addf %51, %53 : vector<8x256xf32>
    %55 = math.tanh %54 : vector<8x256xf32>
    %c0_35 = arith.constant 0 : index
    %c0_36 = arith.constant 0 : index
    %56 = vector.load %arg11[%c0_35, %c0_36] : memref<8x256xf32, #tpu.memory_space<vmem>>, vector<8x256xf32>
    tpu.vector_store %arg11[%c0_35, %c0_36], %55 {strides = array<i32>} : memref<8x256xf32, #tpu.memory_space<vmem>>, vector<8x256xf32>,
    %c0_37 = arith.constant 0 : index
    %c0_38 = arith.constant 0 : index
    %57 = vector.load %arg12[%c0_37, %c0_38] : memref<8x128xf32, #tpu.memory_space<vmem>>, vector<8x128xf32>
    tpu.vector_store %arg12[%c0_37, %c0_38], %34 {strides = array<i32>} : memref<8x128xf32, #tpu.memory_space<vmem>>, vector<8x128xf32>,
    %c0_39 = arith.constant 0 : index
    %c0_40 = arith.constant 0 : index
    %58 = vector.load %arg13[%c0_39, %c0_40] : memref<8x128xf32, #tpu.memory_space<vmem>>, vector<8x128xf32>
    tpu.vector_store %arg13[%c0_39, %c0_40], %22 {strides = array<i32>} : memref<8x128xf32, #tpu.memory_space<vmem>>, vector<8x128xf32>,
    %c0_41 = arith.constant 0 : index
    %c0_42 = arith.constant 0 : index
    %59 = vector.load %arg14[%c0_41, %c0_42] : memref<8x128xf32, #tpu.memory_space<vmem>>, vector<8x128xf32>
    tpu.vector_store %arg14[%c0_41, %c0_42], %31 {strides = array<i32>} : memref<8x128xf32, #tpu.memory_space<vmem>>, vector<8x128xf32>,
    return
  }
  func.func @transform_0(%arg0: i32) -> (i32, i32) {
    %c0_i32 = arith.constant 0 : i32
    %c0_i32_0 = arith.constant 0 : i32
    %c0_i32_1 = arith.constant 0 : i32
    return %c0_i32, %c0_i32_0 : i32, i32
  }
  func.func @transform_1(%arg0: i32) -> (i32, i32) {
    %c0_i32 = arith.constant 0 : i32
    %c0_i32_0 = arith.constant 0 : i32
    %c0_i32_1 = arith.constant 0 : i32
    return %c0_i32, %c0_i32_0 : i32, i32
  }
  func.func @transform_2(%arg0: i32) -> (i32, i32) {
    %c0_i32 = arith.constant 0 : i32
    %c0_i32_0 = arith.constant 0 : i32
    %c0_i32_1 = arith.constant 0 : i32
    return %c0_i32, %c0_i32_0 : i32, i32
  }
  func.func @transform_3(%arg0: i32) -> (i32, i32) {
    %c0_i32 = arith.constant 0 : i32
    %c0_i32_0 = arith.constant 0 : i32
    %c0_i32_1 = arith.constant 0 : i32
    return %c0_i32, %c0_i32_0 : i32, i32
  }
  func.func @transform_4(%arg0: i32) -> (i32, i32) {
    %c0_i32 = arith.constant 0 : i32
    %c0_i32_0 = arith.constant 0 : i32
    %c0_i32_1 = arith.constant 0 : i32
    return %c0_i32, %c0_i32_0 : i32, i32
  }
  func.func @transform_5(%arg0: i32) -> (i32, i32) {
    %c0_i32 = arith.constant 0 : i32
    %c0_i32_0 = arith.constant 0 : i32
    %c0_i32_1 = arith.constant 0 : i32
    return %c0_i32, %c0_i32_0 : i32, i32
  }
  func.func @transform_6(%arg0: i32) -> (i32, i32) {
    %c0_i32 = arith.constant 0 : i32
    %c0_i32_0 = arith.constant 0 : i32
    %c0_i32_1 = arith.constant 0 : i32
    return %c0_i32, %c0_i32_0 : i32, i32
  }
  func.func @transform_7(%arg0: i32) -> (i32, i32) {
    %c0_i32 = arith.constant 0 : i32
    %c0_i32_0 = arith.constant 0 : i32
    %c0_i32_1 = arith.constant 0 : i32
    return %c0_i32, %c0_i32_0 : i32, i32
  }
  func.func @transform_8(%arg0: i32) -> (i32, i32) {
    %c0_i32 = arith.constant 0 : i32
    %c0_i32_0 = arith.constant 0 : i32
    %c0_i32_1 = arith.constant 0 : i32
    return %c0_i32, %c0_i32_0 : i32, i32
  }
  func.func @transform_9(%arg0: i32) -> (i32, i32) {
    %c0_i32 = arith.constant 0 : i32
    %c0_i32_0 = arith.constant 0 : i32
    %c0_i32_1 = arith.constant 0 : i32
    return %c0_i32, %c0_i32_0 : i32, i32
  }
  func.func @transform_10(%arg0: i32) -> (i32, i32) {
    %c0_i32 = arith.constant 0 : i32
    %c0_i32_0 = arith.constant 0 : i32
    %c0_i32_1 = arith.constant 0 : i32
    return %c0_i32, %c0_i32_0 : i32, i32
  }
  func.func @transform_11(%arg0: i32) -> (i32, i32) {
    %c0_i32 = arith.constant 0 : i32
    %c0_i32_0 = arith.constant 0 : i32
    %c0_i32_1 = arith.constant 0 : i32
    return %c0_i32, %c0_i32_0 : i32, i32
  }
  func.func @transform_12(%arg0: i32) -> (i32, i32) {
    %c0_i32 = arith.constant 0 : i32
    %c0_i32_0 = arith.constant 0 : i32
    %c0_i32_1 = arith.constant 0 : i32
    return %c0_i32, %c0_i32_0 : i32, i32
  }
  func.func @transform_13(%arg0: i32) -> (i32, i32) {
    %c0_i32 = arith.constant 0 : i32
    %c0_i32_0 = arith.constant 0 : i32
    %c0_i32_1 = arith.constant 0 : i32
    return %c0_i32, %c0_i32_0 : i32, i32
  }
}

</mosaic_0001>

<bundles_post_ra>
// kernel: cvae_forward.1
= control target key start
LH: loop header
LB: loop body
LE: loop exit
PB: predicated region body
PF: predicated region fallthrough
CT: control target
= control target key end

     0   :  { %19 = vsyncpa [#allocation3], 0  ;;  %s5827_s0 = inlined_call_operand.vmem [shape: f32[8,1024], index: 0, kind: input, shape index: {}]   ;;  %s5828_s1 = inlined_call_operand.vmem [shape: f32[8,128], index: 1, kind: input, shape index: {}]   ;;  %s5829_s2 = inlined_call_operand.hbm [shape: bf16[1024,512], index: 2, kind: input, shape index: {}]   ;;  %s5830_s3 = inlined_call_operand.hbm [shape: bf16[512,256], index: 3, kind: input, shape index: {}]   ;;  %s5831_s4 = inlined_call_operand.vmem [shape: bf16[256,128], index: 4, kind: input, shape index: {}]   ;;  %s5832_s5 = inlined_call_operand.vmem [shape: bf16[256,128], index: 5, kind: input, shape index: {}]   ;;  %s5833_s6 = inlined_call_operand.hbm [shape: bf16[128,256], index: 6, kind: input, shape index: {}]   ;;  %s5834_s7 = inlined_call_operand.hbm [shape: bf16[256,512], index: 7, kind: input, shape index: {}]   ;;  %s5835_s8 = inlined_call_operand.hbm [shape: bf16[512,256], index: 8, kind: input, shape index: {}]   ;;  %s5836_s9 = inlined_call_operand.vmem [shape: f32[8,512], index: 9, kind: input, shape index: {}]   ;;  %s5837_s10 = inlined_call_operand.vmem [shape: f32[8,256], index: 10, kind: output, shape index: {0}]   ;;  %s5838_s11 = inlined_call_operand.vmem [shape: f32[8,128], index: 11, kind: output, shape index: {1}]   ;;  %s5839_s12 = inlined_call_operand.vmem [shape: f32[8,128], index: 12, kind: output, shape index: {2}]   ;;  %s5840_s13 = inlined_call_operand.vmem [shape: f32[8,128], index: 13, kind: output, shape index: {3}]  }
   0x1   :  { %20 = vsyncpa [#allocation5], 0 }
   0x2   :  { %21 = vsyncpa [#allocation8], 0  ;;  %s5442_s25 = smov [#allocation4]   ;;  %s5326_s29 = scalar_lea.hbm %s5830_s3, 8192 }
   0x3   :  { %s43_s26 = sshll.u32 %s5442_s25, 4  ;;  %p5327_p0 = scmp.ne.s32.totalorder %s5830_s3, %s5326_s29  ;;  %s44_s26 = int_to_ptr.vmem [resolvable:$true] %s43_s26 }
   0x4   :  { %p5330_p1 = scmp.lt.u32.totalorder %s5326_s29, %s5830_s3 }
   0x6   :  { %p5332_p2 = pnand %p5330_p1, %p5327_p0 }
   0x8   :  { %5335 = shalt.err (!%p5332_p2)
}
   0x9   :  { %s5336_s17 = scalar_lea.vmem %s44_s26, 8192  ;;  %p5341_p4 = scmp.lt.s32.totalorder %s44_s26, %s44_s26 }
   0xa   :  { %p5337_p3 = scmp.ne.s32.totalorder %s44_s26, %s5336_s17  ;;  %p5342_p5 = scmp.lt.s32.totalorder %s5336_s17, %s5336_s17 }
   0xc   :  { %p5343_p6 = por %p5342_p5, %p5341_p4 }
   0xe   :  { %p5344_p7 = pnand %p5343_p6, %p5337_p3 }
  0x10   :  { %5347 = shalt.err (!%p5344_p7)
}
  0x11   :  { %s5443_s18 = smov 128   ;;  %s5444_s19 = smov 8  }
  0x12   :  { %49 = dma.hbm_to_vmem [thread:$0]  %s5830_s3, 8192, %s44_s26, [#allocation5], %s5443_s18, %s5443_s18, %s5444_s19  }
  0x13   :  { %s5445_s22 = smov [#allocation7]   ;;  %s5446_s24 = smov [#allocation2]  }
  0x14   :  { %s71_s23 = sshll.u32 %s5445_s22, 4  ;;  %s31_s25 = sshll.u32 %s5446_s24, 4  ;;  %s72_s23 = int_to_ptr.vmem [resolvable:$true] %s71_s23  ;;  %s32_s25 = int_to_ptr.vmem [resolvable:$true] %s31_s25 }
  0x15   :  { %s5348_s29 = scalar_lea.hbm %s5834_s7, 8192 }
  0x16   :  { %p5349_p8 = scmp.ne.s32.totalorder %s5834_s7, %s5348_s29  ;;  %p5352_p9 = scmp.lt.u32.totalorder %s5348_s29, %s5834_s7 }
  0x18   :  { %p5354_p10 = pnand %p5352_p9, %p5349_p8 }
  0x1a   :  { %5357 = shalt.err (!%p5354_p10)
}
  0x1b   :  { %s5358_s3 = scalar_lea.vmem %s72_s23, 8192  ;;  %p5363_p12 = scmp.lt.s32.totalorder %s72_s23, %s72_s23 }
  0x1c   :  { %p5359_p11 = scmp.ne.s32.totalorder %s72_s23, %s5358_s3  ;;  %p5364_p13 = scmp.lt.s32.totalorder %s5358_s3, %s5358_s3 }
  0x1e   :  { %p5365_p0 = por %p5364_p13, %p5363_p12 }
  0x20   :  { %p5366_p1 = pnand %p5365_p0, %p5359_p11 }
  0x22   :  { %5369 = shalt.err (!%p5366_p1)
}
  0x23   :  { %s5447_s26 = smov 256   ;;  %s5448_s17 = smov 16  }
  0x24   :  { %77 = dma.hbm_to_vmem [thread:$0]  %s5834_s7, 8192, %s72_s23, [#allocation8], %s5447_s26, %s5447_s26, %s5448_s17  }
  0x25   :  { %s5370_s27 = scalar_lea.hbm %s5829_s2, 32768 }
  0x26   :  { %p5371_p2 = scmp.ne.s32.totalorder %s5829_s2, %s5370_s27  ;;  %p5374_p3 = scmp.lt.u32.totalorder %s5370_s27, %s5829_s2 }
  0x28   :  { %p5376_p4 = pnand %p5374_p3, %p5371_p2 }
  0x2a   :  { %5379 = shalt.err (!%p5376_p4)
}
  0x2b   :  { %s5380_s15 = scalar_lea.vmem %s32_s25, 32768  ;;  %p5385_p6 = scmp.lt.s32.totalorder %s32_s25, %s32_s25 }
  0x2c   :  { %p5381_p5 = scmp.ne.s32.totalorder %s32_s25, %s5380_s15  ;;  %p5386_p7 = scmp.lt.s32.totalorder %s5380_s15, %s5380_s15 }
  0x2e   :  { %p5387_p8 = por %p5386_p7, %p5385_p6 }
  0x30   :  { %p5388_p9 = pnand %p5387_p8, %p5381_p5 }
  0x32   :  { %5391 = shalt.err (!%p5388_p9)
}
  0x33   :  { %37 = dma.hbm_to_vmem [thread:$0]  %s5829_s2, 32768, %s32_s25, [#allocation3], %s5447_s26, %s5447_s26, %s5448_s17  }
  0x34   :  { %s5449_s16 = smov [#allocation6]   ;;  %s5450_s20 = smov [#allocation9]  }
  0x35   :  { %s59_s3 = sshll.u32 %s5449_s16, 4  ;;  %s83_s21 = sshll.u32 %s5450_s20, 4  ;;  %s60_s3 = int_to_ptr.vmem [resolvable:$true] %s59_s3  ;;  %s84_s21 = int_to_ptr.vmem [resolvable:$true] %s83_s21 }
  0x36   :  { %s5392_s27 = scalar_lea.hbm %s5833_s6, 2048 }
  0x37   :  { %p5393_p10 = scmp.ne.s32.totalorder %s5833_s6, %s5392_s27  ;;  %p5396_p11 = scmp.lt.u32.totalorder %s5392_s27, %s5833_s6 }
  0x39   :  { %p5398_p12 = pnand %p5396_p11, %p5393_p10 }
  0x3b   :  { %5401 = shalt.err (!%p5398_p12)
}
  0x3c   :  { %s5402_s2 = scalar_lea.vmem %s60_s3, 2048  ;;  %p5407_p0 = scmp.lt.s32.totalorder %s60_s3, %s60_s3 }
  0x3d   :  { %p5403_p13 = scmp.ne.s32.totalorder %s60_s3, %s5402_s2  ;;  %p5408_p1 = scmp.lt.s32.totalorder %s5402_s2, %s5402_s2 }
  0x3f   :  { %p5409_p2 = por %p5408_p1, %p5407_p0 }
  0x41   :  { %p5410_p3 = pnand %p5409_p2, %p5403_p13 }
  0x43   :  { %5413 = shalt.err (!%p5410_p3)
}
  0x44   :  { %65 = dma.hbm_to_vmem [thread:$0]  %s5833_s6, 2048, %s60_s3, [#allocation5], %s5443_s18, %s5443_s18, %s5444_s19  }
  0x45   :  { %s5414_s7 = scalar_lea.hbm %s5835_s8, 8192 }
  0x46   :  { %p5415_p4 = scmp.ne.s32.totalorder %s5835_s8, %s5414_s7  ;;  %p5418_p5 = scmp.lt.u32.totalorder %s5414_s7, %s5835_s8 }
  0x48   :  { %p5420_p6 = pnand %p5418_p5, %p5415_p4 }
  0x4a   :  { %5423 = shalt.err (!%p5420_p6)
}
  0x4b   :  { %s5424_s24 = scalar_lea.vmem %s84_s21, 8192  ;;  %p5429_p8 = scmp.lt.s32.totalorder %s84_s21, %s84_s21 }
  0x4c   :  { %p5425_p7 = scmp.ne.s32.totalorder %s84_s21, %s5424_s24  ;;  %p5430_p9 = scmp.lt.s32.totalorder %s5424_s24, %s5424_s24 }
  0x4e   :  { %p5431_p10 = por %p5430_p9, %p5429_p8 }
  0x50   :  { %p5432_p11 = pnand %p5431_p10, %p5425_p7 }
  0x52   :  { %5435 = shalt.err (!%p5432_p11)
}
  0x53   :  { %89 = dma.hbm_to_vmem [thread:$0]  %s5835_s8, 8192, %s84_s21, [#allocation8], %s5443_s18, %s5443_s18, %s5444_s19  }
  0x54   :  { %5436 = dma.done.wait [#allocation3], 32768  }
  0x55   :  { %5437 = vsyncadd [#allocation3], 4294934528 }
  0x56   :  { %5438 = dma.done.wait [#allocation5], 10240  }
  0x57   :  { %5439 = vsyncadd [#allocation5], 4294957056 }
  0x58   :  { %5440 = dma.done.wait [#allocation8], 16384  }
  0x59   :  { %5441 = vsyncadd [#allocation8], 4294950912  ;;  %v4592_v0 = vld [vmem:[#allocation2 + $0x4] ss:$16 sps:$4 sm:$0xff]   ;;  %v4594_v1 = vld [vmem:[#allocation2 + $0x20c] ss:$16 sps:$4 sm:$0xff]  }
  0x5a   :  { %1682 = vmatprep.subr.bf16.mxu0 %v4592_v0  ;;  %v4596_v2 = vld [vmem:[#allocation2] ss:$16 sps:$4 sm:$0xff]   ;;  %v4597_v3 = vld [vmem:[#allocation2 + $0x208] ss:$16 sps:$4 sm:$0xff]   ;;  %1887 = vmatprep.subr.bf16.mxu1 %v4594_v1  ;;  %v4598_v4 = vld [vmem:[#allocation2 + $0x24] ss:$16 sps:$4 sm:$0xff]  }
  0x5b   :  { %1683 = vmatpush1.bf16.msra.mxu0 %v4596_v2  ;;  %1888 = vmatpush1.bf16.msra.mxu1 %v4597_v3  ;;  %v4600_v5 = vld [vmem:[#allocation2 + $0x22c] ss:$16 sps:$4 sm:$0xff]   ;;  %v4602_v6 = vld [vmem:[#allocation2 + $0x20] ss:$16 sps:$4 sm:$0xff]   ;;  %v4603_v7 = vld [vmem:[#allocation2 + $0x228] ss:$16 sps:$4 sm:$0xff]  }
  0x5c   :  { %1684 = vmatprep.subr.bf16.mxu0 %v4598_v4  ;;  %1889 = vmatprep.subr.bf16.mxu1 %v4600_v5  ;;  %v4604_v8 = vld [vmem:[#allocation2 + $0x44] ss:$16 sps:$4 sm:$0xff]   ;;  %v4606_v9 = vld [vmem:[#allocation2 + $0x24c] ss:$16 sps:$4 sm:$0xff]   ;;  %v4608_v10 = vld [vmem:[#allocation2 + $0x40] ss:$16 sps:$4 sm:$0xff]  }
  0x5d   :  { %v4609_v11 = vld [vmem:[#allocation2 + $0x248] ss:$16 sps:$4 sm:$0xff]   ;;  %v4610_v12 = vld [vmem:[#allocation2 + $0x64] ss:$16 sps:$4 sm:$0xff]   ;;  %v4612_v13 = vld [vmem:[#allocation2 + $0x26c] ss:$16 sps:$4 sm:$0xff]  }
  0x5e   :  { %v4614_v14 = vld [vmem:[#allocation2 + $0x60] ss:$16 sps:$4 sm:$0xff]   ;;  %v4615_v15 = vld [vmem:[#allocation2 + $0x268] ss:$16 sps:$4 sm:$0xff]   ;;  %v4616_v16 = vld [vmem:[#allocation2 + $0x84] ss:$16 sps:$4 sm:$0xff]  }
  0x5f   :  { %1685 = vmatpush1.bf16.msra.mxu0 %v4602_v6  ;;  %1890 = vmatpush1.bf16.msra.mxu1 %v4603_v7  ;;  %v4618_v17 = vld [vmem:[#allocation2 + $0x28c] ss:$16 sps:$4 sm:$0xff]   ;;  %v4620_v18 = vld [vmem:[#allocation2 + $0x80] ss:$16 sps:$4 sm:$0xff]   ;;  %v4621_v19 = vld [vmem:[#allocation2 + $0x288] ss:$16 sps:$4 sm:$0xff]  }
  0x60   :  { %1686 = vmatprep.subr.bf16.mxu0 %v4604_v8  ;;  %1891 = vmatprep.subr.bf16.mxu1 %v4606_v9  ;;  %v4622_v20 = vld [vmem:[#allocation2 + $0xa4] ss:$16 sps:$4 sm:$0xff]   ;;  %v4624_v21 = vld [vmem:[#allocation2 + $0x2ac] ss:$16 sps:$4 sm:$0xff]   ;;  %v4626_v22 = vld [vmem:[#allocation2 + $0xa0] ss:$16 sps:$4 sm:$0xff]  }
  0x61   :  { %v4627_v23 = vld [vmem:[#allocation2 + $0x2a8] ss:$16 sps:$4 sm:$0xff]   ;;  %v4628_v24 = vld [vmem:[#allocation2 + $0xc4] ss:$16 sps:$4 sm:$0xff]   ;;  %v4630_v25 = vld [vmem:[#allocation2 + $0x2cc] ss:$16 sps:$4 sm:$0xff]  }
  0x62   :  { %v4632_v26 = vld [vmem:[#allocation2 + $0xc0] ss:$16 sps:$4 sm:$0xff]   ;;  %v4633_v27 = vld [vmem:[#allocation2 + $0x2c8] ss:$16 sps:$4 sm:$0xff]   ;;  %v4634_v28 = vld [vmem:[#allocation2 + $0xe4] ss:$16 sps:$4 sm:$0xff]  }
  0x63   :  { %1687 = vmatpush1.bf16.msra.mxu0 %v4608_v10  ;;  %1892 = vmatpush1.bf16.msra.mxu1 %v4609_v11  ;;  %v4636_v29 = vld [vmem:[#allocation2 + $0x2ec] ss:$16 sps:$4 sm:$0xff]   ;;  %v4638_v30 = vld [vmem:[#allocation2 + $0xe0] ss:$16 sps:$4 sm:$0xff]   ;;  %v4639_v31 = vld [vmem:[#allocation2 + $0x2e8] ss:$16 sps:$4 sm:$0xff]  }
  0x64   :  { %1688 = vmatprep.subr.bf16.mxu0 %v4610_v12  ;;  %1893 = vmatprep.subr.bf16.mxu1 %v4612_v13  ;;  %v4640_v32 = vld [vmem:[#allocation2 + $0x104] ss:$16 sps:$4 sm:$0xff]   ;;  %v4642_v33 = vld [vmem:[#allocation2 + $0x30c] ss:$16 sps:$4 sm:$0xff]   ;;  %v4644_v34 = vld [vmem:[#allocation2 + $0x100] ss:$16 sps:$4 sm:$0xff]  }
  0x65   :  { %v4645_v35 = vld [vmem:[#allocation2 + $0x308] ss:$16 sps:$4 sm:$0xff]   ;;  %v4646_v36 = vld [vmem:[#allocation2 + $0x124] ss:$16 sps:$4 sm:$0xff]   ;;  %v4648_v37 = vld [vmem:[#allocation2 + $0x32c] ss:$16 sps:$4 sm:$0xff]  }
  0x66   :  { %v4650_v38 = vld [vmem:[#allocation2 + $0x120] ss:$16 sps:$4 sm:$0xff]   ;;  %v4651_v39 = vld [vmem:[#allocation2 + $0x328] ss:$16 sps:$4 sm:$0xff]   ;;  %v4652_v40 = vld [vmem:[#allocation2 + $0x144] ss:$16 sps:$4 sm:$0xff]  }
  0x67   :  { %1689 = vmatpush1.bf16.msra.mxu0 %v4614_v14  ;;  %1894 = vmatpush1.bf16.msra.mxu1 %v4615_v15  ;;  %v4654_v41 = vld [vmem:[#allocation2 + $0x34c] ss:$16 sps:$4 sm:$0xff]   ;;  %v4656_v42 = vld [vmem:[#allocation2 + $0x140] ss:$16 sps:$4 sm:$0xff]   ;;  %v4657_v43 = vld [vmem:[#allocation2 + $0x348] ss:$16 sps:$4 sm:$0xff]  }
  0x68   :  { %1690 = vmatprep.subr.bf16.mxu0 %v4616_v16  ;;  %1895 = vmatprep.subr.bf16.mxu1 %v4618_v17  ;;  %v4658_v44 = vld [vmem:[#allocation2 + $0x164] ss:$16 sps:$4 sm:$0xff]   ;;  %v4660_v45 = vld [vmem:[#allocation2 + $0x36c] ss:$16 sps:$4 sm:$0xff]   ;;  %v4662_v47 = vld [vmem:[#allocation2 + $0x160] ss:$16 sps:$4 sm:$0xff]  }
  0x69   :  { %v109_v46 = vld [vmem:[%s5827_s0 + $0x8] sm:$0xff]  ;;  %v111_v50 = vld [vmem:[%s5827_s0 + $0x18] sm:$0xff]  ;;  %v4664_v51 = vld [vmem:[#allocation2 + $0x184] ss:$16 sps:$4 sm:$0xff]  }
  0x6a   :  { %v5594_v48 = vpack.c.bf16 %v109_v46, %v109_v46  ;;  %v4663_v49 = vld [vmem:[#allocation2 + $0x368] ss:$16 sps:$4 sm:$0xff]   ;;  %v4666_v52 = vld [vmem:[#allocation2 + $0x38c] ss:$16 sps:$4 sm:$0xff]   ;;  %v119_v53 = vpack.c.bf16 %v111_v50, %v111_v50  ;;  %v4668_v54 = vld [vmem:[#allocation2 + $0x180] ss:$16 sps:$4 sm:$0xff]  }
  0x6b   :  { %1691 = vmatpush1.bf16.msra.mxu0 %v4620_v18  ;;  %1896 = vmatpush1.bf16.msra.mxu1 %v4621_v19  ;;  %v4669_v55 = vld [vmem:[#allocation2 + $0x388] ss:$16 sps:$4 sm:$0xff]   ;;  %v4670_v56 = vld [vmem:[#allocation2 + $0x1a4] ss:$16 sps:$4 sm:$0xff]   ;;  %v4672_v57 = vld [vmem:[#allocation2 + $0x3ac] ss:$16 sps:$4 sm:$0xff]  }
  0x6c   :  { %1692 = vmatprep.subr.bf16.mxu0 %v4622_v20  ;;  %1897 = vmatprep.subr.bf16.mxu1 %v4624_v21  ;;  %v4674_v58 = vld [vmem:[#allocation2 + $0x1a0] ss:$16 sps:$4 sm:$0xff]   ;;  %v4675_v59 = vld [vmem:[#allocation2 + $0x3a8] ss:$16 sps:$4 sm:$0xff]   ;;  %v4676_v60 = vld [vmem:[#allocation2 + $0x1c4] ss:$16 sps:$4 sm:$0xff]  }
  0x6d   :  { %1714 = vmatprep.mubr.bf16.mxu0 %v5594_v48  ;;  %1919 = vmatprep.mubr.bf16.mxu1 %v119_v53  ;;  %v4678_v61 = vld [vmem:[#allocation2 + $0x3cc] ss:$16 sps:$4 sm:$0xff]   ;;  %v4680_v62 = vld [vmem:[#allocation2 + $0x1c0] ss:$16 sps:$4 sm:$0xff]   ;;  %v4681_v63 = vld [vmem:[#allocation2 + $0x3c8] ss:$16 sps:$4 sm:$0xff]  }
  0x6e   :  { %v4682_v0 = vld [vmem:[#allocation2 + $0x1e4] ss:$16 sps:$4 sm:$0xff]   ;;  %v4684_v1 = vld [vmem:[#allocation2 + $0x3ec] ss:$16 sps:$4 sm:$0xff]   ;;  %v4686_v2 = vld [vmem:[#allocation2 + $0x1e0] ss:$16 sps:$4 sm:$0xff]  }
  0x6f   :  { %1693 = vmatpush1.bf16.msra.mxu0 %v4626_v22  ;;  %1898 = vmatpush1.bf16.msra.mxu1 %v4627_v23  ;;  %v4687_v3 = vld [vmem:[#allocation2 + $0x3e8] ss:$16 sps:$4 sm:$0xff]   ;;  %v4690_v4 = vld [vmem:[#allocation2 + $0x204] ss:$16 sps:$4 sm:$0xff]   ;;  %v4693_v7 = vld [vmem:[#allocation2 + $0x40c] ss:$16 sps:$4 sm:$0xff]  }
  0x70   :  { %1694 = vmatprep.subr.bf16.mxu0 %v4628_v24  ;;  %1899 = vmatprep.subr.bf16.mxu1 %v4630_v25  ;;  %v108_v5 = vld [vmem:[%s5827_s0] sm:$0xff]  ;;  %v110_v6 = vld [vmem:[%s5827_s0 + $0x10] sm:$0xff]  ;;  %v4691_v9 = vld [vmem:[#allocation2 + $0x408] ss:$16 sps:$4 sm:$0xff]  }
  0x71   :  { %v4688_v8 = vld [vmem:[#allocation2 + $0x200] ss:$16 sps:$4 sm:$0xff]   ;;  %v5606_v10 = vpack.c.bf16 %v108_v5, %v108_v5  ;;  %v5608_v11 = vpack.c.bf16 %v110_v6, %v110_v6  ;;  %v4696_v12 = vld [vmem:[#allocation2 + $0x224] ss:$16 sps:$4 sm:$0xff]   ;;  %v4699_v13 = vld [vmem:[#allocation2 + $0x42c] ss:$16 sps:$4 sm:$0xff]  }
  0x72   :  { %v4694_v14 = vld [vmem:[#allocation2 + $0x220] ss:$16 sps:$4 sm:$0xff]   ;;  %v4697_v15 = vld [vmem:[#allocation2 + $0x428] ss:$16 sps:$4 sm:$0xff]   ;;  %v4702_v16 = vld [vmem:[#allocation2 + $0x244] ss:$16 sps:$4 sm:$0xff]  }
  0x73   :  { %1695 = vmatpush1.bf16.msra.mxu0 %v4632_v26  ;;  %1900 = vmatpush1.bf16.msra.mxu1 %v4633_v27  ;;  %v4705_v17 = vld [vmem:[#allocation2 + $0x44c] ss:$16 sps:$4 sm:$0xff]   ;;  %v4700_v18 = vld [vmem:[#allocation2 + $0x240] ss:$16 sps:$4 sm:$0xff]   ;;  %v4703_v19 = vld [vmem:[#allocation2 + $0x448] ss:$16 sps:$4 sm:$0xff]  }
  0x74   :  { %1696 = vmatprep.subr.bf16.mxu0 %v4634_v28  ;;  %1901 = vmatprep.subr.bf16.mxu1 %v4636_v29  ;;  %v4708_v20 = vld [vmem:[#allocation2 + $0x264] ss:$16 sps:$4 sm:$0xff]   ;;  %v4711_v21 = vld [vmem:[#allocation2 + $0x46c] ss:$16 sps:$4 sm:$0xff]   ;;  %v4706_v22 = vld [vmem:[#allocation2 + $0x260] ss:$16 sps:$4 sm:$0xff]  }
  0x75   :  { %v4709_v23 = vld [vmem:[#allocation2 + $0x468] ss:$16 sps:$4 sm:$0xff]   ;;  %v4714_v24 = vld [vmem:[#allocation2 + $0x284] ss:$16 sps:$4 sm:$0xff]   ;;  %v4717_v25 = vld [vmem:[#allocation2 + $0x48c] ss:$16 sps:$4 sm:$0xff]  }
  0x76   :  { %v4712_v26 = vld [vmem:[#allocation2 + $0x280] ss:$16 sps:$4 sm:$0xff]   ;;  %v4715_v27 = vld [vmem:[#allocation2 + $0x488] ss:$16 sps:$4 sm:$0xff]   ;;  %v4720_v28 = vld [vmem:[#allocation2 + $0x2a4] ss:$16 sps:$4 sm:$0xff]  }
  0x77   :  { %1697 = vmatpush1.bf16.msra.mxu0 %v4638_v30  ;;  %1902 = vmatpush1.bf16.msra.mxu1 %v4639_v31  ;;  %v4723_v29 = vld [vmem:[#allocation2 + $0x4ac] ss:$16 sps:$4 sm:$0xff]   ;;  %v4718_v30 = vld [vmem:[#allocation2 + $0x2a0] ss:$16 sps:$4 sm:$0xff]   ;;  %v4721_v31 = vld [vmem:[#allocation2 + $0x4a8] ss:$16 sps:$4 sm:$0xff]  }
  0x78   :  { %1698 = vmatprep.subr.bf16.mxu0 %v4640_v32  ;;  %1903 = vmatprep.subr.bf16.mxu1 %v4642_v33  ;;  %v4726_v32 = vld [vmem:[#allocation2 + $0x2c4] ss:$16 sps:$4 sm:$0xff]   ;;  %v4729_v33 = vld [vmem:[#allocation2 + $0x4cc] ss:$16 sps:$4 sm:$0xff]   ;;  %v4745_v50 = vld [vmem:[#allocation2 + $0x528] ss:$16 sps:$4 sm:$0xff]  }
  0x79   :  { %v4744_v46 = vld [vmem:[#allocation2 + $0x324] ss:$16 sps:$4 sm:$0xff]   ;;  %v4772_v5 = vld [vmem:[#allocation2 + $0x3c0] ss:$16 sps:$4 sm:$0xff]   ;;  %v4775_v6 = vld [vmem:[#allocation2 + $0x5c8] ss:$16 sps:$4 sm:$0xff]  }
  0x7b   :  { %1699 = vmatpush1.bf16.msra.mxu0 %v4644_v34  ;;  %1904 = vmatpush1.bf16.msra.mxu1 %v4645_v35  ;;  %v4724_v34 = vld [vmem:[#allocation2 + $0x2c0] ss:$16 sps:$4 sm:$0xff]   ;;  %v4727_v35 = vld [vmem:[#allocation2 + $0x4c8] ss:$16 sps:$4 sm:$0xff]  }
  0x7c   :  { %1700 = vmatprep.subr.bf16.mxu0 %v4646_v36  ;;  %1905 = vmatprep.subr.bf16.mxu1 %v4648_v37  ;;  %v113_v36 = vld [vmem:[%s5827_s0 + $0x28] sm:$0xff]  ;;  %v4732_v37 = vld [vmem:[#allocation2 + $0x2e4] ss:$16 sps:$4 sm:$0xff]  }
  0x7f   :  { %1701 = vmatpush1.bf16.msra.mxu0 %v4650_v38  ;;  %1906 = vmatpush1.bf16.msra.mxu1 %v4651_v39  ;;  %v4735_v38 = vld [vmem:[#allocation2 + $0x4ec] ss:$16 sps:$4 sm:$0xff]   ;;  %v5615_v39 = vpack.c.bf16 %v113_v36, %v113_v36  ;;  %v4816_v36 = vld [vmem:[#allocation2 + $0x4a4] ss:$16 sps:$4 sm:$0xff]  }
  0x80   :  { %1702 = vmatprep.subr.bf16.mxu0 %v4652_v40  ;;  %1907 = vmatprep.subr.bf16.mxu1 %v4654_v41  ;;  %v4730_v40 = vld [vmem:[#allocation2 + $0x2e0] ss:$16 sps:$4 sm:$0xff]   ;;  %v4733_v41 = vld [vmem:[#allocation2 + $0x4e8] ss:$16 sps:$4 sm:$0xff]  }
  0x83   :  { %1703 = vmatpush1.bf16.msra.mxu0 %v4656_v42  ;;  %1908 = vmatpush1.bf16.msra.mxu1 %v4657_v43  ;;  %v4738_v42 = vld [vmem:[#allocation2 + $0x304] ss:$16 sps:$4 sm:$0xff]   ;;  %v4741_v43 = vld [vmem:[#allocation2 + $0x50c] ss:$16 sps:$4 sm:$0xff]  }
  0x84   :  { %1704 = vmatprep.subr.bf16.mxu0 %v4658_v44  ;;  %1909 = vmatprep.subr.bf16.mxu1 %v4660_v45  ;;  %v4736_v44 = vld [vmem:[#allocation2 + $0x300] ss:$16 sps:$4 sm:$0xff]   ;;  %v4739_v45 = vld [vmem:[#allocation2 + $0x508] ss:$16 sps:$4 sm:$0xff]  }
  0x87   :  { %1705 = vmatpush1.bf16.msra.mxu0 %v4662_v47  ;;  %1910 = vmatpush1.bf16.msra.mxu1 %v4663_v49  ;;  %v4747_v47 = vld [vmem:[#allocation2 + $0x52c] ss:$16 sps:$4 sm:$0xff]   ;;  %v4742_v49 = vld [vmem:[#allocation2 + $0x320] ss:$16 sps:$4 sm:$0xff]  }
  0x88   :  { %1706 = vmatprep.subr.bf16.mxu0 %v4664_v51  ;;  %1911 = vmatprep.subr.bf16.mxu1 %v4666_v52  ;;  %v4750_v51 = vld [vmem:[#allocation2 + $0x344] ss:$16 sps:$4 sm:$0xff]   ;;  %v4753_v52 = vld [vmem:[#allocation2 + $0x54c] ss:$16 sps:$4 sm:$0xff]  }
  0x8b   :  { %1707 = vmatpush1.bf16.msra.mxu0 %v4668_v54  ;;  %1912 = vmatpush1.bf16.msra.mxu1 %v4669_v55  ;;  %v4751_v54 = vld [vmem:[#allocation2 + $0x548] ss:$16 sps:$4 sm:$0xff]   ;;  %v4756_v55 = vld [vmem:[#allocation2 + $0x364] ss:$16 sps:$4 sm:$0xff]  }
  0x8c   :  { %1708 = vmatprep.subr.bf16.mxu0 %v4670_v56  ;;  %1913 = vmatprep.subr.bf16.mxu1 %v4672_v57  ;;  %v4759_v56 = vld [vmem:[#allocation2 + $0x56c] ss:$16 sps:$4 sm:$0xff]   ;;  %v4754_v57 = vld [vmem:[#allocation2 + $0x360] ss:$16 sps:$4 sm:$0xff]  }
  0x8f   :  { %1709 = vmatpush1.bf16.msra.mxu0 %v4674_v58  ;;  %1914 = vmatpush1.bf16.msra.mxu1 %v4675_v59  ;;  %v4757_v58 = vld [vmem:[#allocation2 + $0x568] ss:$16 sps:$4 sm:$0xff]   ;;  %v4762_v59 = vld [vmem:[#allocation2 + $0x384] ss:$16 sps:$4 sm:$0xff]  }
  0x90   :  { %1710 = vmatprep.subr.bf16.mxu0 %v4676_v60  ;;  %1915 = vmatprep.subr.bf16.mxu1 %v4678_v61  ;;  %v4765_v60 = vld [vmem:[#allocation2 + $0x58c] ss:$16 sps:$4 sm:$0xff]   ;;  %v4760_v61 = vld [vmem:[#allocation2 + $0x380] ss:$16 sps:$4 sm:$0xff]  }
  0x93   :  { %1711 = vmatpush1.bf16.msra.mxu0 %v4680_v62  ;;  %1916 = vmatpush1.bf16.msra.mxu1 %v4681_v63  ;;  %v4763_v62 = vld [vmem:[#allocation2 + $0x588] ss:$16 sps:$4 sm:$0xff]   ;;  %v4768_v63 = vld [vmem:[#allocation2 + $0x3a4] ss:$16 sps:$4 sm:$0xff]  }
  0x94   :  { %1712 = vmatprep.subr.bf16.mxu0 %v4682_v0  ;;  %1917 = vmatprep.subr.bf16.mxu1 %v4684_v1  ;;  %v4771_v0 = vld [vmem:[#allocation2 + $0x5ac] ss:$16 sps:$4 sm:$0xff]   ;;  %v4766_v1 = vld [vmem:[#allocation2 + $0x3a0] ss:$16 sps:$4 sm:$0xff]  }
  0x97   :  { %1713 = vmatpush1.bf16.msra.mxu0 %v4686_v2  ;;  %1918 = vmatpush1.bf16.msra.mxu1 %v4687_v3  ;;  %v4769_v2 = vld [vmem:[#allocation2 + $0x5a8] ss:$16 sps:$4 sm:$0xff]   ;;  %v4774_v3 = vld [vmem:[#allocation2 + $0x3c4] ss:$16 sps:$4 sm:$0xff]  }
  0x98   :  { %1723 = vmatprep.subr.bf16.mxu0 %v4690_v4  ;;  %1928 = vmatprep.subr.bf16.mxu1 %v4693_v7  ;;  %v4777_v4 = vld [vmem:[#allocation2 + $0x5cc] ss:$16 sps:$4 sm:$0xff]   ;;  %v4780_v7 = vld [vmem:[#allocation2 + $0x3e4] ss:$16 sps:$4 sm:$0xff]  }
  0x9a   :  { %1715 = vmatmul.mubr.bf16.vlgmr.msra.gmra.mrb[0].mxu0 %v5606_v10  ;;  %1920 = vmatmul.mubr.bf16.vlgmr.msra.gmra.mrb[0].mxu1 %v5608_v11 }
  0x9b   :  { %1724 = vmatpush1.bf16.msra.mxu0 %v4688_v8  ;;  %1929 = vmatpush1.bf16.msra.mxu1 %v4691_v9  ;;  %v4783_v8 = vld [vmem:[#allocation2 + $0x5ec] ss:$16 sps:$4 sm:$0xff]   ;;  %v4778_v9 = vld [vmem:[#allocation2 + $0x3e0] ss:$16 sps:$4 sm:$0xff]  }
  0x9c   :  { %1725 = vmatprep.subr.bf16.mxu0 %v4696_v12  ;;  %1930 = vmatprep.subr.bf16.mxu1 %v4699_v13  ;;  %v4781_v12 = vld [vmem:[#allocation2 + $0x5e8] ss:$16 sps:$4 sm:$0xff]   ;;  %v112_v13 = vld [vmem:[%s5827_s0 + $0x20] sm:$0xff] }
  0x9d   :  { %1755 = vmatprep.mubr.bf16.mxu0 %v119_v53  ;;  %1960 = vmatprep.mubr.bf16.mxu1 %v5615_v39  ;;  %v4748_v53 = vld [vmem:[#allocation2 + $0x340] ss:$16 sps:$4 sm:$0xff]  }
  0x9f   :  { %1726 = vmatpush1.bf16.msra.mxu0 %v4694_v14  ;;  %1931 = vmatpush1.bf16.msra.mxu1 %v4697_v15  ;;  %v4786_v14 = vld [vmem:[#allocation2 + $0x404] ss:$16 sps:$4 sm:$0xff]   ;;  %v4789_v15 = vld [vmem:[#allocation2 + $0x60c] ss:$16 sps:$4 sm:$0xff]  }
  0xa0   :  { %1727 = vmatprep.subr.bf16.mxu0 %v4702_v16  ;;  %1932 = vmatprep.subr.bf16.mxu1 %v4705_v17  ;;  %v5621_v16 = vpack.c.bf16 %v112_v13, %v112_v13  ;;  %v4784_v17 = vld [vmem:[#allocation2 + $0x400] ss:$16 sps:$4 sm:$0xff]  }
  0xa1   :  { %v4868_v13 = vld [vmem:[#allocation2 + $0x5c0] ss:$16 sps:$4 sm:$0xff]  }
  0xa3   :  { %1728 = vmatpush1.bf16.msra.mxu0 %v4700_v18  ;;  %1933 = vmatpush1.bf16.msra.mxu1 %v4703_v19  ;;  %v4787_v18 = vld [vmem:[#allocation2 + $0x608] ss:$16 sps:$4 sm:$0xff]   ;;  %v4792_v19 = vld [vmem:[#allocation2 + $0x424] ss:$16 sps:$4 sm:$0xff]  }
  0xa4   :  { %1729 = vmatprep.subr.bf16.mxu0 %v4708_v20  ;;  %1934 = vmatprep.subr.bf16.mxu1 %v4711_v21  ;;  %v4795_v20 = vld [vmem:[#allocation2 + $0x62c] ss:$16 sps:$4 sm:$0xff]  }
  0xa5   :  { %v115_v21 = vld [vmem:[%s5827_s0 + $0x38] sm:$0xff] }
  0xa7   :  { %1730 = vmatpush1.bf16.msra.mxu0 %v4706_v22  ;;  %1935 = vmatpush1.bf16.msra.mxu1 %v4709_v23  ;;  %v4790_v22 = vld [vmem:[#allocation2 + $0x420] ss:$16 sps:$4 sm:$0xff]   ;;  %v4793_v23 = vld [vmem:[#allocation2 + $0x628] ss:$16 sps:$4 sm:$0xff]  }
  0xa8   :  { %1731 = vmatprep.subr.bf16.mxu0 %v4714_v24  ;;  %1936 = vmatprep.subr.bf16.mxu1 %v4717_v25  ;;  %v5628_v24 = vpack.c.bf16 %v115_v21, %v115_v21  ;;  %v4798_v25 = vld [vmem:[#allocation2 + $0x444] ss:$16 sps:$4 sm:$0xff]  }
  0xa9   :  { %v114_v21 = vld [vmem:[%s5827_s0 + $0x30] sm:$0xff] }
  0xab   :  { %1732 = vmatpush1.bf16.msra.mxu0 %v4712_v26  ;;  %1937 = vmatpush1.bf16.msra.mxu1 %v4715_v27  ;;  %v4801_v26 = vld [vmem:[#allocation2 + $0x64c] ss:$16 sps:$4 sm:$0xff]   ;;  %v4796_v27 = vld [vmem:[#allocation2 + $0x440] ss:$16 sps:$4 sm:$0xff]  }
  0xac   :  { %1733 = vmatprep.subr.bf16.mxu0 %v4720_v28  ;;  %1938 = vmatprep.subr.bf16.mxu1 %v4723_v29  ;;  %v4799_v28 = vld [vmem:[#allocation2 + $0x648] ss:$16 sps:$4 sm:$0xff]   ;;  %v4807_v29 = vld [vmem:[#allocation2 + $0x66c] ss:$16 sps:$4 sm:$0xff]  }
  0xaf   :  { %1734 = vmatpush1.bf16.msra.mxu0 %v4718_v30  ;;  %1939 = vmatpush1.bf16.msra.mxu1 %v4721_v31  ;;  %v4802_v30 = vld [vmem:[#allocation2 + $0x460] ss:$16 sps:$4 sm:$0xff]   ;;  %v4805_v31 = vld [vmem:[#allocation2 + $0x668] ss:$16 sps:$4 sm:$0xff]  }
  0xb0   :  { %1735 = vmatprep.subr.bf16.mxu0 %v4726_v32  ;;  %1940 = vmatprep.subr.bf16.mxu1 %v4729_v33  ;;  %v4810_v32 = vld [vmem:[#allocation2 + $0x484] ss:$16 sps:$4 sm:$0xff]   ;;  %v4813_v33 = vld [vmem:[#allocation2 + $0x68c] ss:$16 sps:$4 sm:$0xff]  }
  0xb3   :  { %1736 = vmatpush1.bf16.msra.mxu0 %v4724_v34  ;;  %1941 = vmatpush1.bf16.msra.mxu1 %v4727_v35  ;;  %v4808_v34 = vld [vmem:[#allocation2 + $0x480] ss:$16 sps:$4 sm:$0xff]   ;;  %v4811_v35 = vld [vmem:[#allocation2 + $0x688] ss:$16 sps:$4 sm:$0xff]  }
  0xb4   :  { %1737 = vmatprep.subr.bf16.mxu0 %v4732_v37  ;;  %1942 = vmatprep.subr.bf16.mxu1 %v4735_v38  ;;  %v4819_v37 = vld [vmem:[#allocation2 + $0x6ac] ss:$16 sps:$4 sm:$0xff]   ;;  %v4814_v38 = vld [vmem:[#allocation2 + $0x4a0] ss:$16 sps:$4 sm:$0xff]  }
  0xb7   :  { %1738 = vmatpush1.bf16.msra.mxu0 %v4730_v40  ;;  %1943 = vmatpush1.bf16.msra.mxu1 %v4733_v41  ;;  %v4822_v40 = vld [vmem:[#allocation2 + $0x4c4] ss:$16 sps:$4 sm:$0xff]   ;;  %v4825_v41 = vld [vmem:[#allocation2 + $0x6cc] ss:$16 sps:$4 sm:$0xff]  }
  0xb8   :  { %1739 = vmatprep.subr.bf16.mxu0 %v4738_v42  ;;  %1944 = vmatprep.subr.bf16.mxu1 %v4741_v43  ;;  %v4820_v42 = vld [vmem:[#allocation2 + $0x4c0] ss:$16 sps:$4 sm:$0xff]   ;;  %v4823_v43 = vld [vmem:[#allocation2 + $0x6c8] ss:$16 sps:$4 sm:$0xff]  }
  0xbb   :  { %1740 = vmatpush1.bf16.msra.mxu0 %v4736_v44  ;;  %1945 = vmatpush1.bf16.msra.mxu1 %v4739_v45  ;;  %v4828_v44 = vld [vmem:[#allocation2 + $0x4e4] ss:$16 sps:$4 sm:$0xff]   ;;  %v4831_v45 = vld [vmem:[#allocation2 + $0x6ec] ss:$16 sps:$4 sm:$0xff]  }
  0xbc   :  { %1741 = vmatprep.subr.bf16.mxu0 %v4744_v46  ;;  %1946 = vmatprep.subr.bf16.mxu1 %v4747_v47  ;;  %v4826_v46 = vld [vmem:[#allocation2 + $0x4e0] ss:$16 sps:$4 sm:$0xff]   ;;  %v4829_v47 = vld [vmem:[#allocation2 + $0x6e8] ss:$16 sps:$4 sm:$0xff]  }
  0xbf   :  { %1742 = vmatpush1.bf16.msra.mxu0 %v4742_v49  ;;  %1947 = vmatpush1.bf16.msra.mxu1 %v4745_v50  ;;  %v4834_v49 = vld [vmem:[#allocation2 + $0x504] ss:$16 sps:$4 sm:$0xff]   ;;  %v4837_v50 = vld [vmem:[#allocation2 + $0x70c] ss:$16 sps:$4 sm:$0xff]  }
  0xc0   :  { %1743 = vmatprep.subr.bf16.mxu0 %v4750_v51  ;;  %1948 = vmatprep.subr.bf16.mxu1 %v4753_v52  ;;  %v4832_v51 = vld [vmem:[#allocation2 + $0x500] ss:$16 sps:$4 sm:$0xff]   ;;  %v4835_v52 = vld [vmem:[#allocation2 + $0x708] ss:$16 sps:$4 sm:$0xff]  }
  0xc3   :  { %1744 = vmatpush1.bf16.msra.mxu0 %v4748_v53  ;;  %1949 = vmatpush1.bf16.msra.mxu1 %v4751_v54  ;;  %v4840_v53 = vld [vmem:[#allocation2 + $0x524] ss:$16 sps:$4 sm:$0xff]   ;;  %v4843_v54 = vld [vmem:[#allocation2 + $0x72c] ss:$16 sps:$4 sm:$0xff]  }
  0xc4   :  { %1745 = vmatprep.subr.bf16.mxu0 %v4756_v55  ;;  %1950 = vmatprep.subr.bf16.mxu1 %v4759_v56  ;;  %v4838_v55 = vld [vmem:[#allocation2 + $0x520] ss:$16 sps:$4 sm:$0xff]   ;;  %v4841_v56 = vld [vmem:[#allocation2 + $0x728] ss:$16 sps:$4 sm:$0xff]  }
  0xc7   :  { %1746 = vmatpush1.bf16.msra.mxu0 %v4754_v57  ;;  %1951 = vmatpush1.bf16.msra.mxu1 %v4757_v58  ;;  %v4846_v57 = vld [vmem:[#allocation2 + $0x544] ss:$16 sps:$4 sm:$0xff]   ;;  %v4849_v58 = vld [vmem:[#allocation2 + $0x74c] ss:$16 sps:$4 sm:$0xff]  }
  0xc8   :  { %1747 = vmatprep.subr.bf16.mxu0 %v4762_v59  ;;  %1952 = vmatprep.subr.bf16.mxu1 %v4765_v60  ;;  %v4844_v59 = vld [vmem:[#allocation2 + $0x540] ss:$16 sps:$4 sm:$0xff]   ;;  %v4847_v60 = vld [vmem:[#allocation2 + $0x748] ss:$16 sps:$4 sm:$0xff]  }
  0xcb   :  { %1748 = vmatpush1.bf16.msra.mxu0 %v4760_v61  ;;  %1953 = vmatpush1.bf16.msra.mxu1 %v4763_v62  ;;  %v4852_v61 = vld [vmem:[#allocation2 + $0x564] ss:$16 sps:$4 sm:$0xff]   ;;  %v4855_v62 = vld [vmem:[#allocation2 + $0x76c] ss:$16 sps:$4 sm:$0xff]  }
  0xcc   :  { %1749 = vmatprep.subr.bf16.mxu0 %v4768_v63  ;;  %1954 = vmatprep.subr.bf16.mxu1 %v4771_v0  ;;  %v4850_v63 = vld [vmem:[#allocation2 + $0x560] ss:$16 sps:$4 sm:$0xff]   ;;  %v4853_v0 = vld [vmem:[#allocation2 + $0x768] ss:$16 sps:$4 sm:$0xff]  }
  0xcf   :  { %1750 = vmatpush1.bf16.msra.mxu0 %v4766_v1  ;;  %1955 = vmatpush1.bf16.msra.mxu1 %v4769_v2  ;;  %v4858_v1 = vld [vmem:[#allocation2 + $0x584] ss:$16 sps:$4 sm:$0xff]   ;;  %v4861_v2 = vld [vmem:[#allocation2 + $0x78c] ss:$16 sps:$4 sm:$0xff]  }
  0xd0   :  { %1751 = vmatprep.subr.bf16.mxu0 %v4774_v3  ;;  %1956 = vmatprep.subr.bf16.mxu1 %v4777_v4  ;;  %v4856_v3 = vld [vmem:[#allocation2 + $0x580] ss:$16 sps:$4 sm:$0xff]   ;;  %v4859_v4 = vld [vmem:[#allocation2 + $0x788] ss:$16 sps:$4 sm:$0xff]  }
  0xd3   :  { %1752 = vmatpush1.bf16.msra.mxu0 %v4772_v5  ;;  %1957 = vmatpush1.bf16.msra.mxu1 %v4775_v6  ;;  %v4864_v5 = vld [vmem:[#allocation2 + $0x5a4] ss:$16 sps:$4 sm:$0xff]   ;;  %v4867_v6 = vld [vmem:[#allocation2 + $0x7ac] ss:$16 sps:$4 sm:$0xff]  }
  0xd4   :  { %1753 = vmatprep.subr.bf16.mxu0 %v4780_v7  ;;  %1958 = vmatprep.subr.bf16.mxu1 %v4783_v8  ;;  %v4862_v7 = vld [vmem:[#allocation2 + $0x5a0] ss:$16 sps:$4 sm:$0xff]   ;;  %v4865_v8 = vld [vmem:[#allocation2 + $0x7a8] ss:$16 sps:$4 sm:$0xff]  }
  0xd7   :  { %1754 = vmatpush1.bf16.msra.mxu0 %v4778_v9  ;;  %1959 = vmatpush1.bf16.msra.mxu1 %v4781_v12  ;;  %v4870_v9 = vld [vmem:[#allocation2 + $0x5c4] ss:$16 sps:$4 sm:$0xff]   ;;  %v4873_v12 = vld [vmem:[#allocation2 + $0x7cc] ss:$16 sps:$4 sm:$0xff]  }
  0xd8   :  { %1764 = vmatprep.subr.bf16.mxu0 %v4786_v14  ;;  %1969 = vmatprep.subr.bf16.mxu1 %v4789_v15  ;;  %v4871_v14 = vld [vmem:[#allocation2 + $0x7c8] ss:$16 sps:$4 sm:$0xff]   ;;  %v4876_v15 = vld [vmem:[#allocation2 + $0x5e4] ss:$16 sps:$4 sm:$0xff]  }
  0xda   :  { %1756 = vmatmul.mubr.bf16.vlgmr.msra.gmra.mrb[0].mxu0 %v5608_v11  ;;  %1961 = vmatmul.mubr.bf16.vlgmr.msra.gmra.mrb[0].mxu1 %v5621_v16  ;;  %v4804_v11 = vld [vmem:[#allocation2 + $0x464] ss:$16 sps:$4 sm:$0xff]  }
  0xdb   :  { %1765 = vmatpush1.bf16.msra.mxu0 %v4784_v17  ;;  %1970 = vmatpush1.bf16.msra.mxu1 %v4787_v18  ;;  %v4879_v17 = vld [vmem:[#allocation2 + $0x7ec] ss:$16 sps:$4 sm:$0xff]   ;;  %v4874_v18 = vld [vmem:[#allocation2 + $0x5e0] ss:$16 sps:$4 sm:$0xff]  }
  0xdc   :  { %1766 = vmatprep.subr.bf16.mxu0 %v4792_v19  ;;  %1971 = vmatprep.subr.bf16.mxu1 %v4795_v20  ;;  %v4877_v19 = vld [vmem:[#allocation2 + $0x7e8] ss:$16 sps:$4 sm:$0xff]   ;;  %v4882_v20 = vld [vmem:[#allocation2 + $0x604] ss:$16 sps:$4 sm:$0xff]  }
  0xdd   :  { %2001 = vmatprep.mubr.bf16.mxu1 %v5628_v24  ;;  %1796 = vmatprep.mubr.bf16.mxu0 %v5615_v39  ;;  %v4817_v39 = vld [vmem:[#allocation2 + $0x6a8] ss:$16 sps:$4 sm:$0xff]  }
  0xdf   :  { %1767 = vmatpush1.bf16.msra.mxu0 %v4790_v22  ;;  %1972 = vmatpush1.bf16.msra.mxu1 %v4793_v23  ;;  %v4880_v22 = vld [vmem:[#allocation2 + $0x600] ss:$16 sps:$4 sm:$0xff]   ;;  %v5635_v23 = vpack.c.bf16 %v114_v21, %v114_v21  ;;  %v4975_v21 = vld [vmem:[#allocation2 + $0x1ec] ss:$16 sps:$4 sm:$0xff]  }
  0xe0   :  { %1768 = vmatprep.subr.bf16.mxu0 %v4798_v25  ;;  %1973 = vmatprep.subr.bf16.mxu1 %v4801_v26  ;;  %v4885_v25 = vld [vmem:[#allocation2 + $0x624] ss:$16 sps:$4 sm:$0xff]   ;;  %v4883_v26 = vld [vmem:[#allocation2 + $0x620] ss:$16 sps:$4 sm:$0xff]  }
  0xe3   :  { %1769 = vmatpush1.bf16.msra.mxu0 %v4796_v27  ;;  %1974 = vmatpush1.bf16.msra.mxu1 %v4799_v28  ;;  %v4888_v27 = vld [vmem:[#allocation2 + $0x644] ss:$16 sps:$4 sm:$0xff]   ;;  %v4886_v28 = vld [vmem:[#allocation2 + $0x640] ss:$16 sps:$4 sm:$0xff]  }
  0xe4   :  { %1770 = vmatprep.subr.bf16.mxu0 %v4804_v11  ;;  %1975 = vmatprep.subr.bf16.mxu1 %v4807_v29  ;;  %v4891_v11 = vld [vmem:[#allocation2 + $0x664] ss:$16 sps:$4 sm:$0xff]   ;;  %v4889_v29 = vld [vmem:[#allocation2 + $0x660] ss:$16 sps:$4 sm:$0xff]  }
  0xe7   :  { %1771 = vmatpush1.bf16.msra.mxu0 %v4802_v30  ;;  %1976 = vmatpush1.bf16.msra.mxu1 %v4805_v31  ;;  %v4894_v30 = vld [vmem:[#allocation2 + $0x684] ss:$16 sps:$4 sm:$0xff]   ;;  %v4892_v31 = vld [vmem:[#allocation2 + $0x680] ss:$16 sps:$4 sm:$0xff]  }
  0xe8   :  { %1772 = vmatprep.subr.bf16.mxu0 %v4810_v32  ;;  %1977 = vmatprep.subr.bf16.mxu1 %v4813_v33  ;;  %v4897_v32 = vld [vmem:[#allocation2 + $0x6a4] ss:$16 sps:$4 sm:$0xff]   ;;  %v4895_v33 = vld [vmem:[#allocation2 + $0x6a0] ss:$16 sps:$4 sm:$0xff]  }
  0xeb   :  { %1773 = vmatpush1.bf16.msra.mxu0 %v4808_v34  ;;  %1978 = vmatpush1.bf16.msra.mxu1 %v4811_v35  ;;  %v4900_v34 = vld [vmem:[#allocation2 + $0x6c4] ss:$16 sps:$4 sm:$0xff]  }
  0xec   :  { %1774 = vmatprep.subr.bf16.mxu0 %v4816_v36  ;;  %1979 = vmatprep.subr.bf16.mxu1 %v4819_v37  ;;  %v4903_v35 = vld [vmem:[#allocation2 + $0x6e4] ss:$16 sps:$4 sm:$0xff]   ;;  %v4904_v37 = vld [vmem:[#allocation2 + $0x700] ss:$16 sps:$4 sm:$0xff]  }
  0xed   :  { %v4906_v36 = vld [vmem:[#allocation2 + $0x704] ss:$16 sps:$4 sm:$0xff]  }
  0xef   :  { %1775 = vmatpush1.bf16.msra.mxu0 %v4814_v38  ;;  %1980 = vmatpush1.bf16.msra.mxu1 %v4817_v39  ;;  %v4909_v38 = vld [vmem:[#allocation2 + $0x724] ss:$16 sps:$4 sm:$0xff]   ;;  %v4907_v39 = vld [vmem:[#allocation2 + $0x720] ss:$16 sps:$4 sm:$0xff]  }
  0xf0   :  { %1776 = vmatprep.subr.bf16.mxu0 %v4822_v40  ;;  %1981 = vmatprep.subr.bf16.mxu1 %v4825_v41  ;;  %v4912_v40 = vld [vmem:[#allocation2 + $0x744] ss:$16 sps:$4 sm:$0xff]   ;;  %v4910_v41 = vld [vmem:[#allocation2 + $0x740] ss:$16 sps:$4 sm:$0xff]  }
  0xf3   :  { %1777 = vmatpush1.bf16.msra.mxu0 %v4820_v42  ;;  %1982 = vmatpush1.bf16.msra.mxu1 %v4823_v43  ;;  %v4915_v42 = vld [vmem:[#allocation2 + $0x764] ss:$16 sps:$4 sm:$0xff]   ;;  %v4913_v43 = vld [vmem:[#allocation2 + $0x760] ss:$16 sps:$4 sm:$0xff]  }
  0xf4   :  { %1778 = vmatprep.subr.bf16.mxu0 %v4828_v44  ;;  %1983 = vmatprep.subr.bf16.mxu1 %v4831_v45  ;;  %v4918_v44 = vld [vmem:[#allocation2 + $0x784] ss:$16 sps:$4 sm:$0xff]   ;;  %v4916_v45 = vld [vmem:[#allocation2 + $0x780] ss:$16 sps:$4 sm:$0xff]  }
  0xf7   :  { %1779 = vmatpush1.bf16.msra.mxu0 %v4826_v46  ;;  %1984 = vmatpush1.bf16.msra.mxu1 %v4829_v47  ;;  %v4921_v46 = vld [vmem:[#allocation2 + $0x7a4] ss:$16 sps:$4 sm:$0xff]   ;;  %v4919_v47 = vld [vmem:[#allocation2 + $0x7a0] ss:$16 sps:$4 sm:$0xff]  }
  0xf8   :  { %1780 = vmatprep.subr.bf16.mxu0 %v4834_v49  ;;  %1985 = vmatprep.subr.bf16.mxu1 %v4837_v50  ;;  %v4924_v49 = vld [vmem:[#allocation2 + $0x7c4] ss:$16 sps:$4 sm:$0xff]   ;;  %v4922_v50 = vld [vmem:[#allocation2 + $0x7c0] ss:$16 sps:$4 sm:$0xff]  }
  0xfb   :  { %1781 = vmatpush1.bf16.msra.mxu0 %v4832_v51  ;;  %1986 = vmatpush1.bf16.msra.mxu1 %v4835_v52  ;;  %v4927_v51 = vld [vmem:[#allocation2 + $0x7e4] ss:$16 sps:$4 sm:$0xff]   ;;  %v4925_v52 = vld [vmem:[#allocation2 + $0x7e0] ss:$16 sps:$4 sm:$0xff]  }
  0xfc   :  { %1782 = vmatprep.subr.bf16.mxu0 %v4840_v53  ;;  %1987 = vmatprep.subr.bf16.mxu1 %v4843_v54  ;;  %v4930_v53 = vld [vmem:[#allocation2 + $0xc] ss:$16 sps:$4 sm:$0xff]   ;;  %v4928_v54 = vld [vmem:[#allocation2 + $0x8] ss:$16 sps:$4 sm:$0xff]  }
  0xff   :  { %1783 = vmatpush1.bf16.msra.mxu0 %v4838_v55  ;;  %1988 = vmatpush1.bf16.msra.mxu1 %v4841_v56  ;;  %v4933_v55 = vld [vmem:[#allocation2 + $0x2c] ss:$16 sps:$4 sm:$0xff]   ;;  %v4931_v56 = vld [vmem:[#allocation2 + $0x28] ss:$16 sps:$4 sm:$0xff]  }
 0x100   :  { %1784 = vmatprep.subr.bf16.mxu0 %v4846_v57  ;;  %1989 = vmatprep.subr.bf16.mxu1 %v4849_v58  ;;  %v4936_v57 = vld [vmem:[#allocation2 + $0x4c] ss:$16 sps:$4 sm:$0xff]   ;;  %v4934_v58 = vld [vmem:[#allocation2 + $0x48] ss:$16 sps:$4 sm:$0xff]  }
 0x103   :  { %1785 = vmatpush1.bf16.msra.mxu0 %v4844_v59  ;;  %1990 = vmatpush1.bf16.msra.mxu1 %v4847_v60  ;;  %v4939_v59 = vld [vmem:[#allocation2 + $0x6c] ss:$16 sps:$4 sm:$0xff]   ;;  %v4937_v60 = vld [vmem:[#allocation2 + $0x68] ss:$16 sps:$4 sm:$0xff]  }
 0x104   :  { %1786 = vmatprep.subr.bf16.mxu0 %v4852_v61  ;;  %1991 = vmatprep.subr.bf16.mxu1 %v4855_v62  ;;  %v4942_v61 = vld [vmem:[#allocation2 + $0x8c] ss:$16 sps:$4 sm:$0xff]   ;;  %v4940_v62 = vld [vmem:[#allocation2 + $0x88] ss:$16 sps:$4 sm:$0xff]  }
 0x107   :  { %1787 = vmatpush1.bf16.msra.mxu0 %v4850_v63  ;;  %1992 = vmatpush1.bf16.msra.mxu1 %v4853_v0  ;;  %v4945_v63 = vld [vmem:[#allocation2 + $0xac] ss:$16 sps:$4 sm:$0xff]   ;;  %v4943_v0 = vld [vmem:[#allocation2 + $0xa8] ss:$16 sps:$4 sm:$0xff]  }
 0x108   :  { %1788 = vmatprep.subr.bf16.mxu0 %v4858_v1  ;;  %1993 = vmatprep.subr.bf16.mxu1 %v4861_v2  ;;  %v4948_v1 = vld [vmem:[#allocation2 + $0xcc] ss:$16 sps:$4 sm:$0xff]   ;;  %v4946_v2 = vld [vmem:[#allocation2 + $0xc8] ss:$16 sps:$4 sm:$0xff]  }
 0x10b   :  { %1789 = vmatpush1.bf16.msra.mxu0 %v4856_v3  ;;  %1994 = vmatpush1.bf16.msra.mxu1 %v4859_v4  ;;  %v4949_v3 = vld [vmem:[#allocation2 + $0xe8] ss:$16 sps:$4 sm:$0xff]   ;;  %v4954_v4 = vld [vmem:[#allocation2 + $0x10c] ss:$16 sps:$4 sm:$0xff]  }
 0x10c   :  { %1790 = vmatprep.subr.bf16.mxu0 %v4864_v5  ;;  %1995 = vmatprep.subr.bf16.mxu1 %v4867_v6  ;;  %v4952_v5 = vld [vmem:[#allocation2 + $0x108] ss:$16 sps:$4 sm:$0xff]   ;;  %v4957_v6 = vld [vmem:[#allocation2 + $0x12c] ss:$16 sps:$4 sm:$0xff]  }
 0x10f   :  { %1791 = vmatpush1.bf16.msra.mxu0 %v4862_v7  ;;  %1996 = vmatpush1.bf16.msra.mxu1 %v4865_v8  ;;  %v4955_v7 = vld [vmem:[#allocation2 + $0x128] ss:$16 sps:$4 sm:$0xff]   ;;  %v4960_v8 = vld [vmem:[#allocation2 + $0x14c] ss:$16 sps:$4 sm:$0xff]  }
 0x110   :  { %1792 = vmatprep.subr.bf16.mxu0 %v4870_v9  ;;  %1997 = vmatprep.subr.bf16.mxu1 %v4873_v12  ;;  %v4958_v9 = vld [vmem:[#allocation2 + $0x148] ss:$16 sps:$4 sm:$0xff]   ;;  %v4963_v12 = vld [vmem:[#allocation2 + $0x16c] ss:$16 sps:$4 sm:$0xff]  }
 0x113   :  { %1793 = vmatpush1.bf16.msra.mxu0 %v4868_v13  ;;  %1998 = vmatpush1.bf16.msra.mxu1 %v4871_v14  ;;  %v4961_v13 = vld [vmem:[#allocation2 + $0x168] ss:$16 sps:$4 sm:$0xff]   ;;  %v4966_v14 = vld [vmem:[#allocation2 + $0x18c] ss:$16 sps:$4 sm:$0xff]  }
 0x114   :  { %1794 = vmatprep.subr.bf16.mxu0 %v4876_v15  ;;  %1999 = vmatprep.subr.bf16.mxu1 %v4879_v17  ;;  %v4964_v15 = vld [vmem:[#allocation2 + $0x188] ss:$16 sps:$4 sm:$0xff]   ;;  %v4969_v17 = vld [vmem:[#allocation2 + $0x1ac] ss:$16 sps:$4 sm:$0xff]  }
 0x117   :  { %1795 = vmatpush1.bf16.msra.mxu0 %v4874_v18  ;;  %2000 = vmatpush1.bf16.msra.mxu1 %v4877_v19  ;;  %v4967_v18 = vld [vmem:[#allocation2 + $0x1a8] ss:$16 sps:$4 sm:$0xff]   ;;  %v4972_v19 = vld [vmem:[#allocation2 + $0x1cc] ss:$16 sps:$4 sm:$0xff]  }
 0x118   :  { %1805 = vmatprep.subr.bf16.mxu0 %v4882_v20  ;;  %v4970_v20 = vld [vmem:[#allocation2 + $0x1c8] ss:$16 sps:$4 sm:$0xff]  }
 0x11a   :  { %2002 = vmatmul.mubr.bf16.vlgmr.msra.gmra.mrb[0].mxu1 %v5635_v23  ;;  %1797 = vmatmul.mubr.bf16.vlgmr.msra.gmra.mrb[0].mxu0 %v5621_v16  ;;  %v4898_v16 = vld [vmem:[#allocation2 + $0x6c0] ss:$16 sps:$4 sm:$0xff]  }
 0x11b   :  { %1806 = vmatpush1.bf16.msra.mxu0 %v4880_v22  ;;  %1837 = vmatprep.mubr.bf16.mxu0 %v5628_v24  ;;  %v4901_v24 = vld [vmem:[#allocation2 + $0x6e0] ss:$16 sps:$4 sm:$0xff]   ;;  %v4973_v22 = vld [vmem:[#allocation2 + $0x1e8] ss:$16 sps:$4 sm:$0xff]  }
 0x11c   :  { %1807 = vmatprep.subr.bf16.mxu0 %v4885_v25  ;;  %v4976_v25 = vld [vmem:[#allocation4] ss:$8 sps:$4 sm:$0xff]  }
 0x11f   :  { %1808 = vmatpush1.bf16.msra.mxu0 %v4883_v26  ;;  %v4981_v26 = vld [vmem:[#allocation4 + $0x14] ss:$8 sps:$4 sm:$0xff]  }
 0x120   :  { %1809 = vmatprep.subr.bf16.mxu0 %v4888_v27  ;;  %v4979_v27 = vld [vmem:[#allocation4 + $0x10] ss:$8 sps:$4 sm:$0xff]  }
 0x123   :  { %1810 = vmatpush1.bf16.msra.mxu0 %v4886_v28  ;;  %v4984_v28 = vld [vmem:[#allocation4 + $0x24] ss:$8 sps:$4 sm:$0xff]  }
 0x124   :  { %1811 = vmatprep.subr.bf16.mxu0 %v4891_v11  ;;  %v4982_v11 = vld [vmem:[#allocation4 + $0x20] ss:$8 sps:$4 sm:$0xff]  }
 0x127   :  { %1812 = vmatpush1.bf16.msra.mxu0 %v4889_v29  ;;  %v4987_v29 = vld [vmem:[#allocation4 + $0x34] ss:$8 sps:$4 sm:$0xff]  }
 0x128   :  { %1813 = vmatprep.subr.bf16.mxu0 %v4894_v30  ;;  %v4985_v30 = vld [vmem:[#allocation4 + $0x30] ss:$8 sps:$4 sm:$0xff]  }
 0x12b   :  { %1814 = vmatpush1.bf16.msra.mxu0 %v4892_v31  ;;  %v4990_v31 = vld [vmem:[#allocation4 + $0x44] ss:$8 sps:$4 sm:$0xff]  }
 0x12c   :  { %1815 = vmatprep.subr.bf16.mxu0 %v4897_v32  ;;  %v4988_v32 = vld [vmem:[#allocation4 + $0x40] ss:$8 sps:$4 sm:$0xff]  }
 0x12f   :  { %1816 = vmatpush1.bf16.msra.mxu0 %v4895_v33  ;;  %v4993_v33 = vld [vmem:[#allocation4 + $0x54] ss:$8 sps:$4 sm:$0xff]  }
 0x130   :  { %1817 = vmatprep.subr.bf16.mxu0 %v4900_v34  ;;  %v4991_v34 = vld [vmem:[#allocation4 + $0x50] ss:$8 sps:$4 sm:$0xff]  }
 0x133   :  { %1818 = vmatpush1.bf16.msra.mxu0 %v4898_v16  ;;  %v4994_v16 = vld [vmem:[#allocation4 + $0x60] ss:$8 sps:$4 sm:$0xff]  }
 0x134   :  { %1819 = vmatprep.subr.bf16.mxu0 %v4903_v35  ;;  %v4999_v35 = vld [vmem:[#allocation4 + $0x74] ss:$8 sps:$4 sm:$0xff]  }
 0x137   :  { %1820 = vmatpush1.bf16.msra.mxu0 %v4901_v24  ;;  %v4997_v24 = vld [vmem:[#allocation4 + $0x70] ss:$8 sps:$4 sm:$0xff]  }
 0x138   :  { %1821 = vmatprep.subr.bf16.mxu0 %v4906_v36  ;;  %v5002_v36 = vld [vmem:[#allocation4 + $0x84] ss:$8 sps:$4 sm:$0xff]  }
 0x13b   :  { %1822 = vmatpush1.bf16.msra.mxu0 %v4904_v37  ;;  %v5000_v37 = vld [vmem:[#allocation4 + $0x80] ss:$8 sps:$4 sm:$0xff]  }
 0x13c   :  { %1823 = vmatprep.subr.bf16.mxu0 %v4909_v38  ;;  %v5005_v38 = vld [vmem:[#allocation4 + $0x94] ss:$8 sps:$4 sm:$0xff]  }
 0x13f   :  { %1824 = vmatpush1.bf16.msra.mxu0 %v4907_v39  ;;  %v5003_v39 = vld [vmem:[#allocation4 + $0x90] ss:$8 sps:$4 sm:$0xff]  }
 0x140   :  { %1825 = vmatprep.subr.bf16.mxu0 %v4912_v40  ;;  %v5008_v40 = vld [vmem:[#allocation4 + $0xa4] ss:$8 sps:$4 sm:$0xff]  }
 0x143   :  { %1826 = vmatpush1.bf16.msra.mxu0 %v4910_v41  ;;  %v5006_v41 = vld [vmem:[#allocation4 + $0xa0] ss:$8 sps:$4 sm:$0xff]  }
 0x144   :  { %1827 = vmatprep.subr.bf16.mxu0 %v4915_v42  ;;  %v5011_v42 = vld [vmem:[#allocation4 + $0xb4] ss:$8 sps:$4 sm:$0xff]  }
 0x147   :  { %1828 = vmatpush1.bf16.msra.mxu0 %v4913_v43  ;;  %v5009_v43 = vld [vmem:[#allocation4 + $0xb0] ss:$8 sps:$4 sm:$0xff]  }
 0x148   :  { %1829 = vmatprep.subr.bf16.mxu0 %v4918_v44  ;;  %v5014_v44 = vld [vmem:[#allocation4 + $0xc4] ss:$8 sps:$4 sm:$0xff]  }
 0x14b   :  { %1830 = vmatpush1.bf16.msra.mxu0 %v4916_v45  ;;  %v5012_v45 = vld [vmem:[#allocation4 + $0xc0] ss:$8 sps:$4 sm:$0xff]  }
 0x14c   :  { %1831 = vmatprep.subr.bf16.mxu0 %v4921_v46  ;;  %v5017_v46 = vld [vmem:[#allocation4 + $0xd4] ss:$8 sps:$4 sm:$0xff]  }
 0x14f   :  { %1832 = vmatpush1.bf16.msra.mxu0 %v4919_v47  ;;  %v5015_v47 = vld [vmem:[#allocation4 + $0xd0] ss:$8 sps:$4 sm:$0xff]  }
 0x150   :  { %1833 = vmatprep.subr.bf16.mxu0 %v4924_v49  ;;  %v5020_v49 = vld [vmem:[#allocation4 + $0xe4] ss:$8 sps:$4 sm:$0xff]  }
 0x153   :  { %1834 = vmatpush1.bf16.msra.mxu0 %v4922_v50  ;;  %v5018_v50 = vld [vmem:[#allocation4 + $0xe0] ss:$8 sps:$4 sm:$0xff]  }
 0x154   :  { %1835 = vmatprep.subr.bf16.mxu0 %v4927_v51  ;;  %v5023_v51 = vld [vmem:[#allocation4 + $0xf4] ss:$8 sps:$4 sm:$0xff]  }
 0x157   :  { %1836 = vmatpush1.bf16.msra.mxu0 %v4925_v52  ;;  %v5021_v52 = vld [vmem:[#allocation4 + $0xf0] ss:$8 sps:$4 sm:$0xff]  }
 0x158   :  { %1846 = vmatprep.subr.bf16.mxu0 %v4930_v53  ;;  %v5026_v53 = vld [vmem:[#allocation4 + $0x104] ss:$8 sps:$4 sm:$0xff]  }
 0x15a   :  { %1838 = vmatmul.mubr.bf16.vlgmr.msra.gmra.mrb[0].mxu0 %v5635_v23  ;;  %v4978_v23 = vld [vmem:[#allocation4 + $0x4] ss:$8 sps:$4 sm:$0xff]  }
 0x15b   :  { %1847 = vmatpush1.bf16.msra.mxu0 %v4928_v54  ;;  %1878 = vmatprep.mubr.bf16.mxu0 %v5594_v48  ;;  %v4951_v48 = vld [vmem:[#allocation2 + $0xec] ss:$16 sps:$4 sm:$0xff]  }
 0x15c   :  { %1848 = vmatprep.subr.bf16.mxu0 %v4933_v55 }
 0x15f   :  { %1849 = vmatpush1.bf16.msra.mxu0 %v4931_v56 }
 0x160   :  { %1850 = vmatprep.subr.bf16.mxu0 %v4936_v57 }
 0x163   :  { %1851 = vmatpush1.bf16.msra.mxu0 %v4934_v58  ;;  %v5072_v58 = vld [vmem:[%s5831_s4 + $0x40] sm:$0xff]  }
 0x164   :  { %1852 = vmatprep.subr.bf16.mxu0 %v4939_v59  ;;  %v5073_v59 = vld [vmem:[%s5831_s4] sm:$0xff]   ;;  %4500 = vmatprep.subr.bf16.mxu1 %v5072_v58  ;;  %v5071_v58 = vld [vmem:[#allocation4 + $0x1f4] ss:$8 sps:$4 sm:$0xff]  }
 0x165   :  { %4501 = vmatpush3.bf16.msra.mxu1 %v5073_v59 }
 0x167   :  { %1853 = vmatpush1.bf16.msra.mxu0 %v4937_v60  ;;  %v5074_v60 = vld [vmem:[%s5831_s4 + $0x48] sm:$0xff]  }
 0x168   :  { %1854 = vmatprep.subr.bf16.mxu0 %v4942_v61  ;;  %v5075_v61 = vld [vmem:[%s5831_s4 + $0x8] sm:$0xff]   ;;  %4502 = vmatprep.subr.bf16.mxu1 %v5074_v60 }
 0x169   :  { %4503 = vmatpush3.bf16.msra.mxu1 %v5075_v61 }
 0x16b   :  { %1855 = vmatpush1.bf16.msra.mxu0 %v4940_v62  ;;  %v5076_v62 = vld [vmem:[%s5831_s4 + $0x50] sm:$0xff]  }
 0x16c   :  { %1856 = vmatprep.subr.bf16.mxu0 %v4945_v63  ;;  %v5077_v63 = vld [vmem:[%s5831_s4 + $0x10] sm:$0xff]   ;;  %4504 = vmatprep.subr.bf16.mxu1 %v5076_v62 }
 0x16d   :  { %4505 = vmatpush3.bf16.msra.mxu1 %v5077_v63 }
 0x16f   :  { %1857 = vmatpush1.bf16.msra.mxu0 %v4943_v0  ;;  %v5078_v0 = vld [vmem:[%s5831_s4 + $0x58] sm:$0xff]  }
 0x170   :  { %1858 = vmatprep.subr.bf16.mxu0 %v4948_v1  ;;  %v5079_v1 = vld [vmem:[%s5831_s4 + $0x18] sm:$0xff]   ;;  %4506 = vmatprep.subr.bf16.mxu1 %v5078_v0 }
 0x171   :  { %4507 = vmatpush3.bf16.msra.mxu1 %v5079_v1  ;;  %v5069_v0 = vld [vmem:[#allocation4 + $0x1f0] ss:$8 sps:$4 sm:$0xff]  }
 0x173   :  { %1859 = vmatpush1.bf16.msra.mxu0 %v4946_v2  ;;  %v5080_v2 = vld [vmem:[%s5831_s4 + $0x60] sm:$0xff]  }
 0x174   :  { %1860 = vmatprep.subr.bf16.mxu0 %v4951_v48  ;;  %v5081_v48 = vld [vmem:[%s5831_s4 + $0x20] sm:$0xff]   ;;  %4508 = vmatprep.subr.bf16.mxu1 %v5080_v2 }
 0x175   :  { %4509 = vmatpush3.bf16.msra.mxu1 %v5081_v48 }
 0x177   :  { %1861 = vmatpush1.bf16.msra.mxu0 %v4949_v3  ;;  %v5082_v3 = vld [vmem:[%s5831_s4 + $0x68] sm:$0xff]  }
 0x178   :  { %1862 = vmatprep.subr.bf16.mxu0 %v4954_v4  ;;  %v5083_v4 = vld [vmem:[%s5831_s4 + $0x28] sm:$0xff]   ;;  %4510 = vmatprep.subr.bf16.mxu1 %v5082_v3 }
 0x179   :  { %4511 = vmatpush3.bf16.msra.mxu1 %v5083_v4 }
 0x17b   :  { %1863 = vmatpush1.bf16.msra.mxu0 %v4952_v5  ;;  %v382_v5 = vlaneseq }
 0x17c   :  { %1864 = vmatprep.subr.bf16.mxu0 %v4957_v6 }
 0x17d   :  { %v5683_v6 = vshrl.u32 %v382_v5, 7 }
 0x17f   :  { %1865 = vmatpush1.bf16.msra.mxu0 %v4955_v7  ;;  %v5686_v7 = vsub.s32 0, %v5683_v6 }
 0x180   :  { %1866 = vmatprep.subr.bf16.mxu0 %v4960_v8  ;;  %v5691_v8 = vld [vmem:[%s5836_s9] ss:$8 sm:$0xf] }
 0x183   :  { %1867 = vmatpush1.bf16.msra.mxu0 %v4958_v9  ;;  %v5694_v9 = vsub.s32 1, %v5683_v6 }
 0x184   :  { %1868 = vmatprep.subr.bf16.mxu0 %v4963_v12  ;;  %v385_v12 = vrot.slane %v5691_v8, %v5686_v7 }
 0x187   :  { %1869 = vmatpush1.bf16.msra.mxu0 %v4961_v13  ;;  %v389_v13 = vrot.slane %v5691_v8, %v5694_v9 }
 0x188   :  { %1870 = vmatprep.subr.bf16.mxu0 %v4966_v14 }
 0x18b   :  { %1871 = vmatpush1.bf16.msra.mxu0 %v4964_v15 }
 0x18c   :  { %1872 = vmatprep.subr.bf16.mxu0 %v4969_v17 }
 0x18f   :  { %1873 = vmatpush1.bf16.msra.mxu0 %v4967_v18 }
 0x190   :  { %1874 = vmatprep.subr.bf16.mxu0 %v4972_v19 }
 0x193   :  { %1875 = vmatpush1.bf16.msra.mxu0 %v4970_v20 }
 0x194   :  { %1876 = vmatprep.subr.bf16.mxu0 %v4975_v21 }
 0x197   :  { %1877 = vmatpush1.bf16.msra.mxu0 %v4973_v22 }
 0x198   :  { %2415 = vmatprep.subr.bf16.mxu0 %v4978_v23 }
 0x19a   :  { %1879 = vmatmul.mubr.bf16.vlgmr.msra.gmra.mrb[4].mxu0 %v5606_v10  ;;  %v4996_v10 = vld [vmem:[#allocation4 + $0x64] ss:$8 sps:$4 sm:$0xff]  }
 0x19b   :  { %2416 = vmatpush1.bf16.msra.mxu0 %v4976_v25  ;;  %v5024_v25 = vld [vmem:[#allocation4 + $0x100] ss:$8 sps:$4 sm:$0xff]  }
 0x19c   :  { %2417 = vmatprep.subr.bf16.mxu0 %v4981_v26 }
 0x19f   :  { %2418 = vmatpush1.bf16.msra.mxu0 %v4979_v27  ;;  %v5029_v27 = vld [vmem:[#allocation4 + $0x114] ss:$8 sps:$4 sm:$0xff]  }
 0x1a0   :  { %2419 = vmatprep.subr.bf16.mxu0 %v4984_v28  ;;  %v5027_v28 = vld [vmem:[#allocation4 + $0x110] ss:$8 sps:$4 sm:$0xff]  }
 0x1a3   :  { %2420 = vmatpush1.bf16.msra.mxu0 %v4982_v11  ;;  %v5032_v11 = vld [vmem:[#allocation4 + $0x124] ss:$8 sps:$4 sm:$0xff]  }
 0x1a4   :  { %2421 = vmatprep.subr.bf16.mxu0 %v4987_v29  ;;  %v5030_v29 = vld [vmem:[#allocation4 + $0x120] ss:$8 sps:$4 sm:$0xff]  }
 0x1a7   :  { %2422 = vmatpush1.bf16.msra.mxu0 %v4985_v30  ;;  %v5035_v30 = vld [vmem:[#allocation4 + $0x134] ss:$8 sps:$4 sm:$0xff]  }
 0x1a8   :  { %2423 = vmatprep.subr.bf16.mxu0 %v4990_v31  ;;  %v5033_v31 = vld [vmem:[#allocation4 + $0x130] ss:$8 sps:$4 sm:$0xff]  }
 0x1ab   :  { %2424 = vmatpush1.bf16.msra.mxu0 %v4988_v32  ;;  %v5038_v32 = vld [vmem:[#allocation4 + $0x144] ss:$8 sps:$4 sm:$0xff]  }
 0x1ac   :  { %2425 = vmatprep.subr.bf16.mxu0 %v4993_v33  ;;  %v5036_v33 = vld [vmem:[#allocation4 + $0x140] ss:$8 sps:$4 sm:$0xff]  }
 0x1af   :  { %2426 = vmatpush1.bf16.msra.mxu0 %v4991_v34  ;;  %v5041_v34 = vld [vmem:[#allocation4 + $0x154] ss:$8 sps:$4 sm:$0xff]  }
 0x1b0   :  { %2427 = vmatprep.subr.bf16.mxu0 %v4996_v10  ;;  %v5039_v10 = vld [vmem:[#allocation4 + $0x150] ss:$8 sps:$4 sm:$0xff]  }
 0x1b3   :  { %2428 = vmatpush1.bf16.msra.mxu0 %v4994_v16  ;;  %v5044_v16 = vld [vmem:[#allocation4 + $0x164] ss:$8 sps:$4 sm:$0xff]  }
 0x1b4   :  { %2429 = vmatprep.subr.bf16.mxu0 %v4999_v35  ;;  %v5042_v35 = vld [vmem:[#allocation4 + $0x160] ss:$8 sps:$4 sm:$0xff]  }
 0x1b7   :  { %2430 = vmatpush1.bf16.msra.mxu0 %v4997_v24  ;;  %v5047_v24 = vld [vmem:[#allocation4 + $0x174] ss:$8 sps:$4 sm:$0xff]  }
 0x1b8   :  { %2431 = vmatprep.subr.bf16.mxu0 %v5002_v36  ;;  %v5045_v36 = vld [vmem:[#allocation4 + $0x170] ss:$8 sps:$4 sm:$0xff]  }
 0x1bb   :  { %2432 = vmatpush1.bf16.msra.mxu0 %v5000_v37  ;;  %v5050_v37 = vld [vmem:[#allocation4 + $0x184] ss:$8 sps:$4 sm:$0xff]  }
 0x1bc   :  { %2433 = vmatprep.subr.bf16.mxu0 %v5005_v38  ;;  %v5048_v38 = vld [vmem:[#allocation4 + $0x180] ss:$8 sps:$4 sm:$0xff]  }
 0x1bf   :  { %2434 = vmatpush1.bf16.msra.mxu0 %v5003_v39  ;;  %v5053_v39 = vld [vmem:[#allocation4 + $0x194] ss:$8 sps:$4 sm:$0xff]  }
 0x1c0   :  { %2435 = vmatprep.subr.bf16.mxu0 %v5008_v40  ;;  %v5051_v40 = vld [vmem:[#allocation4 + $0x190] ss:$8 sps:$4 sm:$0xff]  }
 0x1c3   :  { %2436 = vmatpush1.bf16.msra.mxu0 %v5006_v41  ;;  %v5056_v41 = vld [vmem:[#allocation4 + $0x1a4] ss:$8 sps:$4 sm:$0xff]  }
 0x1c4   :  { %2437 = vmatprep.subr.bf16.mxu0 %v5011_v42  ;;  %v5054_v42 = vld [vmem:[#allocation4 + $0x1a0] ss:$8 sps:$4 sm:$0xff]  }
 0x1c7   :  { %2438 = vmatpush1.bf16.msra.mxu0 %v5009_v43  ;;  %v5059_v43 = vld [vmem:[#allocation4 + $0x1b4] ss:$8 sps:$4 sm:$0xff]  }
 0x1c8   :  { %2439 = vmatprep.subr.bf16.mxu0 %v5014_v44  ;;  %v5057_v44 = vld [vmem:[#allocation4 + $0x1b0] ss:$8 sps:$4 sm:$0xff]  }
 0x1cb   :  { %2440 = vmatpush1.bf16.msra.mxu0 %v5012_v45  ;;  %v5062_v45 = vld [vmem:[#allocation4 + $0x1c4] ss:$8 sps:$4 sm:$0xff]  }
 0x1cc   :  { %2441 = vmatprep.subr.bf16.mxu0 %v5017_v46  ;;  %v5060_v46 = vld [vmem:[#allocation4 + $0x1c0] ss:$8 sps:$4 sm:$0xff]  }
 0x1cf   :  { %2442 = vmatpush1.bf16.msra.mxu0 %v5015_v47  ;;  %v5065_v47 = vld [vmem:[#allocation4 + $0x1d4] ss:$8 sps:$4 sm:$0xff]  }
 0x1d0   :  { %2443 = vmatprep.subr.bf16.mxu0 %v5020_v49  ;;  %v392_v49 = vsub.s32 2, %v5683_v6 }
 0x1d3   :  { %2444 = vmatpush1.bf16.msra.mxu0 %v5018_v50  ;;  %v5063_v50 = vld [vmem:[#allocation4 + $0x1d0] ss:$8 sps:$4 sm:$0xff]  }
 0x1d4   :  { %2445 = vmatprep.subr.bf16.mxu0 %v5023_v51  ;;  %v396_v51 = vsub.s32 3, %v5683_v6  ;;  %v4435_v6 = vld [vmem:[%s5836_s9 + $0x6] ss:$8 sm:$0x3] }
 0x1d7   :  { %2446 = vmatpush1.bf16.msra.mxu0 %v5021_v52  ;;  %v5068_v52 = vld [vmem:[#allocation4 + $0x1e4] ss:$8 sps:$4 sm:$0xff]  }
 0x1d8   :  { %2456 = vmatprep.subr.bf16.mxu0 %v5026_v53  ;;  %v393_v53 = vrot.slane %v5691_v8, %v392_v49 }
 0x1ed   :  { %v5643_v54 = vpop.f32.mrb[0].mxu1 }
 0x1ee   :  { %v5645_v55 = vpop.f32.mrb[1].mxu1 }
 0x1ef   :  { %v2007_v56 = vpop.f32.mrb[2].mxu1 }
 0x1f0   :  { %v2008_v57 = vpop.f32.mrb[3].mxu1  ;;  %v397_v56 = vrot.slane %v5691_v8, %v396_v51 }
 0x1f1   :  { %v5066_v57 = vld [vmem:[#allocation4 + $0x1e0] ss:$8 sps:$4 sm:$0xff]  }
 0x22d   :  { %v1839_v14 = vpop.f32.mrb[0].mxu0 }
 0x22e   :  { %v4544_v15 = vadd.f32 %v1839_v14, %v385_v12  ;;  %v1841_v17 = vpop.f32.mrb[1].mxu0  ;;  %v5084_v12 = vld [vmem:[%s5831_s4 + $0x70] sm:$0xff]   ;;  %v5088_v14 = vld [vmem:[%s5832_s5 + $0x40] sm:$0xff]  }
 0x22f   :  { %v4545_v18 = vadd.f32 %v1841_v17, %v389_v13  ;;  %v1843_v19 = vpop.f32.mrb[2].mxu0  ;;  %v5085_v13 = vld [vmem:[%s5831_s4 + $0x30] sm:$0xff]   ;;  %4512 = vmatprep.subr.bf16.mxu1 %v5084_v12  ;;  %v5157_v12 = vld [vmem:[#allocation7 + $0x8c] ss:$16 sps:$4 sm:$0xff]  }
 0x230   :  { %v2010_v20 = vmax.f32 %v4544_v15, 0.0  ;;  %v1844_v21 = vpop.f32.mrb[3].mxu0  ;;  %4513 = vmatpush3.bf16.msra.mxu1 %v5085_v13  ;;  %v4256_v15 = vld [vmem:[%s5836_s9 + $0x1] ss:$8 sm:$0x3] }
 0x231   :  { %v2011_v22 = vmax.f32 %v4545_v18, 0.0  ;;  %v2088_v17 = vrot.slane %v4256_v15, %v5686_v7  ;;  %v2092_v18 = vrot.slane %v4256_v15, %v5694_v9  ;;  %v5155_v13 = vld [vmem:[#allocation7 + $0x88] ss:$16 sps:$4 sm:$0xff]  }
 0x232   :  { %v2014_v26 = vpack.c.bf16 %v2010_v20, %v2010_v20  ;;  %v5167_v15 = vld [vmem:[#allocation7 + $0xc8] ss:$16 sps:$4 sm:$0xff]  }
 0x233   :  { %v2015_v23 = vpack.c.bf16 %v2011_v22, %v2011_v22 }
 0x235   :  { %2447 = vmatprep.mubr.bf16.mxu0 %v2015_v23 }
 0x236   :  { %2448 = vmatmul.mubr.bf16.vlgmr.msra.gmra.mrb[8].mxu0 %v2014_v26 }
 0x237   :  { %2457 = vmatpush1.bf16.msra.mxu0 %v5024_v25 }
 0x238   :  { %2458 = vmatprep.subr.bf16.mxu0 %v5029_v27 }
 0x23b   :  { %2459 = vmatpush1.bf16.msra.mxu0 %v5027_v28 }
 0x23c   :  { %2460 = vmatprep.subr.bf16.mxu0 %v5032_v11  ;;  %v5089_v11 = vld [vmem:[%s5832_s5] sm:$0xff]  }
 0x23f   :  { %2461 = vmatpush1.bf16.msra.mxu0 %v5030_v29 }
 0x240   :  { %2462 = vmatprep.subr.bf16.mxu0 %v5035_v30  ;;  %v5090_v30 = vld [vmem:[%s5832_s5 + $0x48] sm:$0xff]  }
 0x243   :  { %2463 = vmatpush1.bf16.msra.mxu0 %v5033_v31  ;;  %v5091_v31 = vld [vmem:[%s5832_s5 + $0x8] sm:$0xff]  }
 0x244   :  { %2464 = vmatprep.subr.bf16.mxu0 %v5038_v32  ;;  %v5092_v32 = vld [vmem:[%s5832_s5 + $0x50] sm:$0xff]  }
 0x247   :  { %2465 = vmatpush1.bf16.msra.mxu0 %v5036_v33  ;;  %v5093_v33 = vld [vmem:[%s5832_s5 + $0x10] sm:$0xff]  }
 0x248   :  { %2466 = vmatprep.subr.bf16.mxu0 %v5041_v34  ;;  %v5094_v34 = vld [vmem:[%s5832_s5 + $0x58] sm:$0xff]  }
 0x24b   :  { %2467 = vmatpush1.bf16.msra.mxu0 %v5039_v10  ;;  %v5095_v10 = vld [vmem:[%s5832_s5 + $0x18] sm:$0xff]  }
 0x24c   :  { %2468 = vmatprep.subr.bf16.mxu0 %v5044_v16  ;;  %v5096_v16 = vld [vmem:[%s5832_s5 + $0x60] sm:$0xff]  }
 0x24f   :  { %2469 = vmatpush1.bf16.msra.mxu0 %v5042_v35  ;;  %v5097_v35 = vld [vmem:[%s5832_s5 + $0x20] sm:$0xff]  }
 0x250   :  { %2470 = vmatprep.subr.bf16.mxu0 %v5047_v24  ;;  %v5098_v24 = vld [vmem:[%s5832_s5 + $0x68] sm:$0xff]  }
 0x253   :  { %2471 = vmatpush1.bf16.msra.mxu0 %v5045_v36  ;;  %v5099_v36 = vld [vmem:[%s5832_s5 + $0x28] sm:$0xff]  }
 0x254   :  { %2472 = vmatprep.subr.bf16.mxu0 %v5050_v37  ;;  %v5100_v37 = vld [vmem:[%s5832_s5 + $0x70] sm:$0xff]  }
 0x257   :  { %2473 = vmatpush1.bf16.msra.mxu0 %v5048_v38  ;;  %v5101_v38 = vld [vmem:[%s5832_s5 + $0x30] sm:$0xff]  }
 0x258   :  { %2474 = vmatprep.subr.bf16.mxu0 %v5053_v39  ;;  %v5102_v39 = vld [vmem:[%s5832_s5 + $0x78] sm:$0xff]  }
 0x25b   :  { %2475 = vmatpush1.bf16.msra.mxu0 %v5051_v40  ;;  %v5103_v40 = vld [vmem:[%s5832_s5 + $0x38] sm:$0xff]  }
 0x25c   :  { %2476 = vmatprep.subr.bf16.mxu0 %v5056_v41  ;;  %v5104_v41 = vld [vmem:[#allocation6] ss:$8 sps:$4 sm:$0xff]  }
 0x25f   :  { %2477 = vmatpush1.bf16.msra.mxu0 %v5054_v42  ;;  %v5106_v42 = vld [vmem:[#allocation6 + $0x4] ss:$8 sps:$4 sm:$0xff]  }
 0x260   :  { %2478 = vmatprep.subr.bf16.mxu0 %v5059_v43  ;;  %v5109_v43 = vld [vmem:[#allocation6 + $0x14] ss:$8 sps:$4 sm:$0xff]  }
 0x263   :  { %2479 = vmatpush1.bf16.msra.mxu0 %v5057_v44  ;;  %v5107_v44 = vld [vmem:[#allocation6 + $0x10] ss:$8 sps:$4 sm:$0xff]  }
 0x264   :  { %2480 = vmatprep.subr.bf16.mxu0 %v5062_v45  ;;  %v5112_v45 = vld [vmem:[#allocation6 + $0x24] ss:$8 sps:$4 sm:$0xff]  }
 0x267   :  { %2481 = vmatpush1.bf16.msra.mxu0 %v5060_v46  ;;  %v5110_v46 = vld [vmem:[#allocation6 + $0x20] ss:$8 sps:$4 sm:$0xff]  }
 0x268   :  { %2482 = vmatprep.subr.bf16.mxu0 %v5065_v47  ;;  %v5115_v47 = vld [vmem:[#allocation6 + $0x34] ss:$8 sps:$4 sm:$0xff]  }
 0x26b   :  { %2483 = vmatpush1.bf16.msra.mxu0 %v5063_v50  ;;  %v5113_v50 = vld [vmem:[#allocation6 + $0x30] ss:$8 sps:$4 sm:$0xff]  }
 0x26c   :  { %2484 = vmatprep.subr.bf16.mxu0 %v5068_v52  ;;  %v5118_v52 = vld [vmem:[#allocation6 + $0x44] ss:$8 sps:$4 sm:$0xff]  }
 0x26d   :  { %v1880_v59 = vpop.f32.mrb[4].mxu0 }
 0x26e   :  { %v1881_v60 = vadd.f32 %v1880_v59, %v393_v53  ;;  %v1882_v61 = vpop.f32.mrb[5].mxu0  ;;  %v5116_v53 = vld [vmem:[#allocation6 + $0x40] ss:$8 sps:$4 sm:$0xff]  }
 0x26f   :  { %v1883_v62 = vadd.f32 %v1882_v61, %v397_v56  ;;  %v1884_v63 = vpop.f32.mrb[6].mxu0  ;;  %2485 = vmatpush1.bf16.msra.mxu0 %v5066_v57  ;;  %v5121_v56 = vld [vmem:[#allocation6 + $0x54] ss:$8 sps:$4 sm:$0xff]   ;;  %v5119_v57 = vld [vmem:[#allocation6 + $0x50] ss:$8 sps:$4 sm:$0xff]  }
 0x270   :  { %v4547_v1 = vadd.f32 %v5643_v54, %v1881_v60  ;;  %v1885_v2 = vpop.f32.mrb[7].mxu0  ;;  %2486 = vmatprep.subr.bf16.mxu0 %v5071_v58  ;;  %v5086_v54 = vld [vmem:[%s5831_s4 + $0x78] sm:$0xff]   ;;  %v5124_v58 = vld [vmem:[#allocation6 + $0x64] ss:$8 sps:$4 sm:$0xff]   ;;  %v5122_v59 = vld [vmem:[#allocation6 + $0x60] ss:$8 sps:$4 sm:$0xff]  }
 0x271   :  { %v4549_v48 = vadd.f32 %v5645_v55, %v1883_v62  ;;  %v5087_v55 = vld [vmem:[%s5831_s4 + $0x38] sm:$0xff]   ;;  %4514 = vmatprep.subr.bf16.mxu1 %v5086_v54  ;;  %v5451_v62 = vmov 0   ;;  %v5130_v63 = vld [vmem:[#allocation7 + $0x4] ss:$16 sps:$4 sm:$0xff]  }
 0x272   :  { %v2012_v3 = vmax.f32 %v4547_v1, 0.0  ;;  %4515 = vmatpush3.bf16.msra.mxu1 %v5087_v55  ;;  %v5125_v60 = vld [vmem:[#allocation6 + $0x70] ss:$8 sps:$4 sm:$0xff]   ;;  %v5127_v61 = vld [vmem:[#allocation6 + $0x74] ss:$8 sps:$4 sm:$0xff]  }
 0x273   :  { %v2013_v4 = vmax.f32 %v4549_v48, 0.0  ;;  %2487 = vmatpush1.bf16.msra.mxu0 %v5069_v0  ;;  %4522 = vmatprep.subr.bf16.mxu1 %v5088_v14  ;;  %v5131_v0 = vld [vmem:[#allocation7 + $0x8] ss:$16 sps:$4 sm:$0xff]   ;;  %v5133_v1 = vld [vmem:[#allocation7 + $0xc] ss:$16 sps:$4 sm:$0xff]  }
 0x274   :  { %v2016_v8 = vpack.c.bf16 %v2012_v3, %v2012_v3  ;;  %v5139_v2 = vld [vmem:[#allocation7 + $0x2c] ss:$16 sps:$4 sm:$0xff]   ;;  %3446 = vmatprep.subr.bf16.mxu0 %v5133_v1  ;;  %v5137_v48 = vld [vmem:[#allocation7 + $0x28] ss:$16 sps:$4 sm:$0xff]   ;;  %v5160_v1 = vld [vmem:[#allocation7 + $0xa4] ss:$16 sps:$4 sm:$0xff]  }
 0x275   :  { %v2017_v5 = vpack.c.bf16 %v2013_v4, %v2013_v4  ;;  %v5145_v3 = vld [vmem:[#allocation7 + $0x4c] ss:$16 sps:$4 sm:$0xff]   ;;  %v5143_v4 = vld [vmem:[#allocation7 + $0x48] ss:$16 sps:$4 sm:$0xff]  }
 0x276   :  { %v5163_v54 = vld [vmem:[#allocation7 + $0xac] ss:$16 sps:$4 sm:$0xff]   ;;  %v5161_v55 = vld [vmem:[#allocation7 + $0xa8] ss:$16 sps:$4 sm:$0xff]  }
 0x277   :  { %2488 = vmatprep.mubr.bf16.mxu0 %v2017_v5  ;;  %v5151_v5 = vld [vmem:[#allocation7 + $0x6c] ss:$16 sps:$4 sm:$0xff]  }
 0x278   :  { %2489 = vmatmul.mubr.bf16.vlgmr.msra.gmra.mrb[8].mxu0 %v2016_v8  ;;  %v5149_v8 = vld [vmem:[#allocation7 + $0x68] ss:$16 sps:$4 sm:$0xff]   ;;  %v5169_v14 = vld [vmem:[#allocation7 + $0xcc] ss:$16 sps:$4 sm:$0xff]  }
 0x279   :  { %3447 = vmatpush1.bf16.msra.mxu0 %v5131_v0  ;;  %v5152_v0 = vld [vmem:[#allocation7 + $0x80] ss:$16 sps:$4 sm:$0xff]  }
 0x27a   :  { %3448 = vmatprep.subr.bf16.mxu0 %v5139_v2  ;;  %v5158_v2 = vld [vmem:[#allocation7 + $0xa0] ss:$16 sps:$4 sm:$0xff]  }
 0x27d   :  { %3449 = vmatpush1.bf16.msra.mxu0 %v5137_v48  ;;  %v5166_v48 = vld [vmem:[#allocation7 + $0xc4] ss:$16 sps:$4 sm:$0xff]  }
 0x27e   :  { %3450 = vmatprep.subr.bf16.mxu0 %v5145_v3  ;;  %v5164_v3 = vld [vmem:[#allocation7 + $0xc0] ss:$16 sps:$4 sm:$0xff]  }
 0x281   :  { %3451 = vmatpush1.bf16.msra.mxu0 %v5143_v4  ;;  %v5172_v4 = vld [vmem:[#allocation7 + $0xe4] ss:$16 sps:$4 sm:$0xff]  }
 0x282   :  { %3452 = vmatprep.subr.bf16.mxu0 %v5151_v5  ;;  %v5170_v5 = vld [vmem:[#allocation7 + $0xe0] ss:$16 sps:$4 sm:$0xff]  }
 0x285   :  { %3453 = vmatpush1.bf16.msra.mxu0 %v5149_v8  ;;  %v5178_v8 = vld [vmem:[#allocation7 + $0x104] ss:$16 sps:$4 sm:$0xff]  }
 0x286   :  { %3454 = vmatprep.subr.bf16.mxu0 %v5157_v12  ;;  %v5176_v12 = vld [vmem:[#allocation7 + $0x100] ss:$16 sps:$4 sm:$0xff]  }
 0x289   :  { %3455 = vmatpush1.bf16.msra.mxu0 %v5155_v13  ;;  %v5184_v13 = vld [vmem:[#allocation7 + $0x124] ss:$16 sps:$4 sm:$0xff]  }
 0x28a   :  { %3456 = vmatprep.subr.bf16.mxu0 %v5163_v54  ;;  %v5182_v54 = vld [vmem:[#allocation7 + $0x120] ss:$16 sps:$4 sm:$0xff]  }
 0x28d   :  { %3457 = vmatpush1.bf16.msra.mxu0 %v5161_v55  ;;  %v5190_v55 = vld [vmem:[#allocation7 + $0x144] ss:$16 sps:$4 sm:$0xff]  }
 0x28e   :  { %3458 = vmatprep.subr.bf16.mxu0 %v5169_v14  ;;  %v5188_v14 = vld [vmem:[#allocation7 + $0x140] ss:$16 sps:$4 sm:$0xff]  }
 0x291   :  { %3459 = vmatpush1.bf16.msra.mxu0 %v5167_v15  ;;  %v5196_v15 = vld [vmem:[#allocation7 + $0x164] ss:$16 sps:$4 sm:$0xff]  }
 0x34b   :  { %v2490_v19 = vpop.f32.mrb[8].mxu0 }
 0x34c   :  { %v4550_v20 = vadd.f32 %v2490_v19, %v2088_v17  ;;  %v2492_v21 = vpop.f32.mrb[9].mxu0  ;;  %v5175_v17 = vld [vmem:[#allocation7 + $0xec] ss:$16 sps:$4 sm:$0xff]  }
 0x34d   :  { %v4551_v22 = vadd.f32 %v2492_v21, %v2092_v18  ;;  %v2494_v23 = vpop.f32.mrb[10].mxu0  ;;  %v5173_v18 = vld [vmem:[#allocation7 + $0xe8] ss:$16 sps:$4 sm:$0xff]   ;;  %3460 = vmatprep.subr.bf16.mxu0 %v5175_v17  ;;  %v5181_v19 = vld [vmem:[#allocation7 + $0x10c] ss:$16 sps:$4 sm:$0xff]  }
 0x34e   :  { %v2497_v25 = vmax.f32 %v4550_v20, 0.0  ;;  %v2495_v26 = vpop.f32.mrb[11].mxu0  ;;  %3461 = vmatpush1.bf16.msra.mxu0 %v5173_v18  ;;  %v5179_v20 = vld [vmem:[#allocation7 + $0x108] ss:$16 sps:$4 sm:$0xff]   ;;  %v5187_v21 = vld [vmem:[#allocation7 + $0x12c] ss:$16 sps:$4 sm:$0xff]  }
 0x34f   :  { %v2498_v27 = vmax.f32 %v4551_v22, 0.0  ;;  %3462 = vmatprep.subr.bf16.mxu0 %v5181_v19  ;;  %v5185_v22 = vld [vmem:[#allocation7 + $0x128] ss:$16 sps:$4 sm:$0xff]   ;;  %v5193_v23 = vld [vmem:[#allocation7 + $0x14c] ss:$16 sps:$4 sm:$0xff]  }
 0x350   :  { %v2499_v29 = vpack.c.bf16 %v2497_v25, %v2497_v25  ;;  %v5191_v25 = vld [vmem:[#allocation7 + $0x148] ss:$16 sps:$4 sm:$0xff]   ;;  %v5199_v26 = vld [vmem:[#allocation7 + $0x16c] ss:$16 sps:$4 sm:$0xff]   ;;  %v5194_v17 = vld [vmem:[#allocation7 + $0x160] ss:$16 sps:$4 sm:$0xff]  }
 0x351   :  { %v2500_v28 = vpack.c.bf16 %v2498_v27, %v2498_v27  ;;  %v5197_v27 = vld [vmem:[#allocation7 + $0x168] ss:$16 sps:$4 sm:$0xff]   ;;  %v5202_v18 = vld [vmem:[#allocation7 + $0x184] ss:$16 sps:$4 sm:$0xff]   ;;  %v5200_v19 = vld [vmem:[#allocation7 + $0x180] ss:$16 sps:$4 sm:$0xff]  }
 0x352   :  { %3463 = vmatpush1.bf16.msra.mxu0 %v5179_v20  ;;  %v5208_v20 = vld [vmem:[#allocation7 + $0x1a4] ss:$16 sps:$4 sm:$0xff]  }
 0x353   :  { %2662 = vmatprep.mubr.bf16.mxu1 %v2500_v28  ;;  %3464 = vmatprep.subr.bf16.mxu0 %v5187_v21  ;;  %v5206_v21 = vld [vmem:[#allocation7 + $0x1a0] ss:$16 sps:$4 sm:$0xff]  }
 0x354   :  { %2663 = vmatmul.mubr.bf16.vlgmr.msra.gmra.mrb[4].mxu1 %v2499_v29 }
 0x355   :  { %4523 = vmatpush3.bf16.msra.mxu1 %v5089_v11  ;;  %2831 = vmatprep.mubr.bf16.mxu1 %v2500_v28  ;;  %v5205_v28 = vld [vmem:[#allocation7 + $0x18c] ss:$16 sps:$4 sm:$0xff]   ;;  %v5203_v11 = vld [vmem:[#allocation7 + $0x188] ss:$16 sps:$4 sm:$0xff]  }
 0x356   :  { %4524 = vmatprep.subr.bf16.mxu1 %v5090_v30  ;;  %3465 = vmatpush1.bf16.msra.mxu0 %v5185_v22  ;;  %v5209_v30 = vld [vmem:[#allocation7 + $0x1a8] ss:$16 sps:$4 sm:$0xff]   ;;  %v5214_v22 = vld [vmem:[#allocation7 + $0x1c4] ss:$16 sps:$4 sm:$0xff]  }
 0x357   :  { %3466 = vmatprep.subr.bf16.mxu0 %v5193_v23  ;;  %v5212_v23 = vld [vmem:[#allocation7 + $0x1c0] ss:$16 sps:$4 sm:$0xff]  }
 0x359   :  { %4525 = vmatpush3.bf16.msra.mxu1 %v5091_v31  ;;  %v5217_v31 = vld [vmem:[#allocation7 + $0x1cc] ss:$16 sps:$4 sm:$0xff]  }
 0x35a   :  { %4526 = vmatprep.subr.bf16.mxu1 %v5092_v32  ;;  %3467 = vmatpush1.bf16.msra.mxu0 %v5191_v25  ;;  %v5215_v32 = vld [vmem:[#allocation7 + $0x1c8] ss:$16 sps:$4 sm:$0xff]   ;;  %v5220_v25 = vld [vmem:[#allocation7 + $0x1e4] ss:$16 sps:$4 sm:$0xff]  }
 0x35b   :  { %3468 = vmatprep.subr.bf16.mxu0 %v5199_v26  ;;  %v5223_v26 = vld [vmem:[#allocation7 + $0x1ec] ss:$16 sps:$4 sm:$0xff]  }
 0x35d   :  { %4527 = vmatpush3.bf16.msra.mxu1 %v5093_v33 }
 0x35e   :  { %4528 = vmatprep.subr.bf16.mxu1 %v5094_v34  ;;  %3469 = vmatpush1.bf16.msra.mxu0 %v5197_v27  ;;  %v2533_v34 = vld [vmem:[%s5836_s9 + $0x2] ss:$0 sm:$0xff] }
 0x35f   :  { %3470 = vmatprep.subr.bf16.mxu0 %v5205_v28  ;;  %v5218_v27 = vld [vmem:[#allocation7 + $0x1e0] ss:$16 sps:$4 sm:$0xff]   ;;  %v5221_v28 = vld [vmem:[#allocation7 + $0x1e8] ss:$16 sps:$4 sm:$0xff]  }
 0x361   :  { %4529 = vmatpush3.bf16.msra.mxu1 %v5095_v10 }
 0x362   :  { %4530 = vmatprep.subr.bf16.mxu1 %v5096_v16  ;;  %3471 = vmatpush1.bf16.msra.mxu0 %v5203_v11  ;;  %v5226_v11 = vld [vmem:[#allocation9 + $0x4] ss:$8 sps:$4 sm:$0xff]  }
 0x365   :  { %4531 = vmatpush3.bf16.msra.mxu1 %v5097_v35 }
 0x366   :  { %4532 = vmatprep.subr.bf16.mxu1 %v5098_v24 }
 0x369   :  { %4533 = vmatpush3.bf16.msra.mxu1 %v5099_v36 }
 0x36a   :  { %4534 = vmatprep.subr.bf16.mxu1 %v5100_v37 }
 0x36d   :  { %4535 = vmatpush3.bf16.msra.mxu1 %v5101_v38  ;;  %v2702_v38 = vld [vmem:[%s5836_s9 + $0x3] ss:$0 sm:$0xff] }
 0x36e   :  { %4536 = vmatprep.subr.bf16.mxu1 %v5102_v39 }
 0x371   :  { %4537 = vmatpush3.bf16.msra.mxu1 %v5103_v40 }
 0x372   :  { %2955 = vmatprep.subr.bf16.mxu1 %v5106_v42 }
 0x374   :  { %2832 = vmatmul.mubr.bf16.vlgmr.msra.gmra.mrb[8].mxu1 %v2499_v29  ;;  %v5211_v29 = vld [vmem:[#allocation7 + $0x1ac] ss:$16 sps:$4 sm:$0xff]  }
 0x375   :  { %2956 = vmatpush1.bf16.msra.mxu1 %v5104_v41  ;;  %2987 = vmatprep.mubr.bf16.mxu1 %v5451_v62  ;;  %v5146_v62 = vld [vmem:[#allocation7 + $0x60] ss:$16 sps:$4 sm:$0xff]  }
 0x376   :  { %2957 = vmatprep.subr.bf16.mxu1 %v5109_v43  ;;  %3472 = vmatprep.subr.bf16.mxu0 %v5211_v29  ;;  %v4353_v29 = vld [vmem:[%s5836_s9 + $0x4] ss:$8 sm:$0x3] }
 0x377   :  { %3473 = vmatpush1.bf16.msra.mxu0 %v5209_v30  ;;  %v2868_v30 = vrot.slane %v4353_v29, %v5686_v7 }
 0x378   :  { %3474 = vmatprep.subr.bf16.mxu0 %v5217_v31  ;;  %v2872_v31 = vrot.slane %v4353_v29, %v5694_v9 }
 0x379   :  { %2958 = vmatpush1.bf16.msra.mxu1 %v5107_v44 }
 0x37a   :  { %2959 = vmatprep.subr.bf16.mxu1 %v5112_v45 }
 0x37b   :  { %3475 = vmatpush1.bf16.msra.mxu0 %v5215_v32 }
 0x37c   :  { %3476 = vmatprep.subr.bf16.mxu0 %v5223_v26 }
 0x37d   :  { %2960 = vmatpush1.bf16.msra.mxu1 %v5110_v46  ;;  %v2842_v46 = vld [vmem:[%s5828_s1] sm:$0xff] }
 0x37e   :  { %2961 = vmatprep.subr.bf16.mxu1 %v5115_v47 }
 0x37f   :  { %3477 = vmatpush1.bf16.msra.mxu0 %v5221_v28 }
 0x381   :  { %2962 = vmatpush1.bf16.msra.mxu1 %v5113_v50 }
 0x382   :  { %2963 = vmatprep.subr.bf16.mxu1 %v5118_v52 }
 0x385   :  { %2964 = vmatpush1.bf16.msra.mxu1 %v5116_v53  ;;  %v5128_v53 = vld [vmem:[#allocation7] ss:$16 sps:$4 sm:$0xff]  }
 0x386   :  { %2965 = vmatprep.subr.bf16.mxu1 %v5121_v56 }
 0x389   :  { %2966 = vmatpush1.bf16.msra.mxu1 %v5119_v57  ;;  %v5136_v57 = vld [vmem:[#allocation7 + $0x24] ss:$16 sps:$4 sm:$0xff]  }
 0x38a   :  { %2967 = vmatprep.subr.bf16.mxu1 %v5124_v58  ;;  %v5134_v58 = vld [vmem:[#allocation7 + $0x20] ss:$16 sps:$4 sm:$0xff]  }
 0x38d   :  { %2968 = vmatpush1.bf16.msra.mxu1 %v5122_v59  ;;  %v5142_v59 = vld [vmem:[#allocation7 + $0x44] ss:$16 sps:$4 sm:$0xff]  }
 0x38e   :  { %2969 = vmatprep.subr.bf16.mxu1 %v5127_v61  ;;  %v5148_v61 = vld [vmem:[#allocation7 + $0x64] ss:$16 sps:$4 sm:$0xff]  }
 0x391   :  { %2970 = vmatpush1.bf16.msra.mxu1 %v5125_v60  ;;  %v5140_v60 = vld [vmem:[#allocation7 + $0x40] ss:$16 sps:$4 sm:$0xff]  }
 0x392   :  { %3405 = vmatprep.subr.bf16.mxu1 %v5130_v63  ;;  %v5154_v63 = vld [vmem:[#allocation7 + $0x84] ss:$16 sps:$4 sm:$0xff]  }
 0x427   :  { %v4516_v33 = vpop.f32.mrb[4].mxu1 }
 0x428   :  { %v4517_v10 = vpop.f32.mrb[5].mxu1 }
 0x429   :  { %v4518_v16 = vadd.f32 %v4517_v10, %v4516_v33  ;;  %v4519_v35 = vpop.f32.mrb[6].mxu1 }
 0x42a   :  { %v4520_v24 = vpop.f32.mrb[7].mxu1 }
 0x42b   :  { %v2665_v36 = vadd.f32 %v4518_v16, %v2533_v34 }
 0x42d   :  { %3979 = vst [vmem:[%s5839_s12] sm:$0xff] %v2665_v36 }
 0x447   :  { %v4538_v37 = vpop.f32.mrb[8].mxu1 }
 0x448   :  { %v4539_v39 = vpop.f32.mrb[9].mxu1 }
 0x449   :  { %v4540_v40 = vadd.f32 %v4539_v39, %v4538_v37  ;;  %v4541_v41 = vpop.f32.mrb[10].mxu1  ;;  %v5227_v39 = vld [vmem:[#allocation9 + $0x10] ss:$8 sps:$4 sm:$0xff]  }
 0x44a   :  { %v4542_v42 = vpop.f32.mrb[11].mxu1  ;;  %v5230_v41 = vld [vmem:[#allocation9 + $0x20] ss:$8 sps:$4 sm:$0xff]  }
 0x44b   :  { %v2834_v43 = vadd.f32 %v4540_v40, %v2702_v38  ;;  %v5229_v38 = vld [vmem:[#allocation9 + $0x14] ss:$8 sps:$4 sm:$0xff]   ;;  %v5232_v40 = vld [vmem:[#allocation9 + $0x24] ss:$8 sps:$4 sm:$0xff]  }
 0x44c   :  { %v5235_v42 = vld [vmem:[#allocation9 + $0x34] ss:$8 sps:$4 sm:$0xff]  }
 0x44d   :  { %v2839_v44 = vmul.f32 0.5, %v2834_v43  ;;  %v5233_v43 = vld [vmem:[#allocation9 + $0x30] ss:$8 sps:$4 sm:$0xff]  }
 0x44f   :  { %v2840_v45 = vmul.f32 1.442695, %v2839_v44  ;;  %v5238_v44 = vld [vmem:[#allocation9 + $0x44] ss:$8 sps:$4 sm:$0xff]  }
 0x451   :  { %5320 = vpow2.f32 %v2840_v45  ;;  %v5236_v45 = vld [vmem:[#allocation9 + $0x40] ss:$8 sps:$4 sm:$0xff]  }
 0x45b   :  { %v5321_v47 = vpop.eup %5320 }
 0x45c   :  { %3980 = vst [vmem:[%s5840_s13] sm:$0xff] %v5321_v47  ;;  %v2843_v50 = vmul.f32 %v5321_v47, %v2842_v46  ;;  %v5241_v46 = vld [vmem:[#allocation9 + $0x54] ss:$8 sps:$4 sm:$0xff]   ;;  %v5239_v47 = vld [vmem:[#allocation9 + $0x50] ss:$8 sps:$4 sm:$0xff]  }
 0x45e   :  { %v2844_v52 = vadd.f32 %v2843_v50, %v2665_v36  ;;  %v5224_v36 = vld [vmem:[#allocation9] ss:$8 sps:$4 sm:$0xff]   ;;  %v5244_v50 = vld [vmem:[#allocation9 + $0x64] ss:$8 sps:$4 sm:$0xff]  }
 0x460   :  { %v2845_v56 = vpack.c.bf16 %v2844_v52, %v2844_v52  ;;  %3978 = vst [vmem:[%s5838_s11] sm:$0xff] %v2844_v52  ;;  %v5242_v52 = vld [vmem:[#allocation9 + $0x60] ss:$8 sps:$4 sm:$0xff]  }
 0x462   :  { %2988 = vmatmul.mubr.bf16.vlgmr.msra.gmra.mrb[12].mxu1 %v2845_v56  ;;  %v5245_v56 = vld [vmem:[#allocation9 + $0x70] ss:$8 sps:$4 sm:$0xff]  }
 0x463   :  { %3406 = vmatpush1.bf16.msra.mxu1 %v5128_v53  ;;  %v5247_v53 = vld [vmem:[#allocation9 + $0x74] ss:$8 sps:$4 sm:$0xff]  }
 0x464   :  { %3407 = vmatprep.subr.bf16.mxu1 %v5136_v57  ;;  %v5250_v57 = vld [vmem:[#allocation9 + $0x84] ss:$8 sps:$4 sm:$0xff]  }
 0x467   :  { %3408 = vmatpush1.bf16.msra.mxu1 %v5134_v58  ;;  %v5248_v58 = vld [vmem:[#allocation9 + $0x80] ss:$8 sps:$4 sm:$0xff]  }
 0x468   :  { %3409 = vmatprep.subr.bf16.mxu1 %v5142_v59  ;;  %v5253_v59 = vld [vmem:[#allocation9 + $0x94] ss:$8 sps:$4 sm:$0xff]  }
 0x46b   :  { %3410 = vmatpush1.bf16.msra.mxu1 %v5140_v60  ;;  %v5251_v60 = vld [vmem:[#allocation9 + $0x90] ss:$8 sps:$4 sm:$0xff]  }
 0x46c   :  { %3411 = vmatprep.subr.bf16.mxu1 %v5148_v61  ;;  %v5256_v61 = vld [vmem:[#allocation9 + $0xa4] ss:$8 sps:$4 sm:$0xff]  }
 0x46f   :  { %3412 = vmatpush1.bf16.msra.mxu1 %v5146_v62  ;;  %v5254_v62 = vld [vmem:[#allocation9 + $0xa0] ss:$8 sps:$4 sm:$0xff]  }
 0x470   :  { %3413 = vmatprep.subr.bf16.mxu1 %v5154_v63  ;;  %v5259_v63 = vld [vmem:[#allocation9 + $0xb4] ss:$8 sps:$4 sm:$0xff]  }
 0x473   :  { %3414 = vmatpush1.bf16.msra.mxu1 %v5152_v0  ;;  %v5257_v0 = vld [vmem:[#allocation9 + $0xb0] ss:$8 sps:$4 sm:$0xff]  }
 0x474   :  { %3415 = vmatprep.subr.bf16.mxu1 %v5160_v1  ;;  %v5262_v1 = vld [vmem:[#allocation9 + $0xc4] ss:$8 sps:$4 sm:$0xff]  }
 0x477   :  { %3416 = vmatpush1.bf16.msra.mxu1 %v5158_v2  ;;  %v5260_v2 = vld [vmem:[#allocation9 + $0xc0] ss:$8 sps:$4 sm:$0xff]  }
 0x478   :  { %3417 = vmatprep.subr.bf16.mxu1 %v5166_v48  ;;  %v5265_v48 = vld [vmem:[#allocation9 + $0xd4] ss:$8 sps:$4 sm:$0xff]  }
 0x47b   :  { %3418 = vmatpush1.bf16.msra.mxu1 %v5164_v3  ;;  %v5263_v3 = vld [vmem:[#allocation9 + $0xd0] ss:$8 sps:$4 sm:$0xff]  }
 0x47c   :  { %3419 = vmatprep.subr.bf16.mxu1 %v5172_v4  ;;  %v5268_v4 = vld [vmem:[#allocation9 + $0xe4] ss:$8 sps:$4 sm:$0xff]  }
 0x47f   :  { %3420 = vmatpush1.bf16.msra.mxu1 %v5170_v5  ;;  %v5266_v5 = vld [vmem:[#allocation9 + $0xe0] ss:$8 sps:$4 sm:$0xff]  }
 0x480   :  { %3421 = vmatprep.subr.bf16.mxu1 %v5178_v8  ;;  %v5271_v8 = vld [vmem:[#allocation9 + $0xf4] ss:$8 sps:$4 sm:$0xff]  }
 0x483   :  { %3422 = vmatpush1.bf16.msra.mxu1 %v5176_v12  ;;  %v5269_v12 = vld [vmem:[#allocation9 + $0xf0] ss:$8 sps:$4 sm:$0xff]  }
 0x484   :  { %3423 = vmatprep.subr.bf16.mxu1 %v5184_v13  ;;  %v5274_v13 = vld [vmem:[#allocation9 + $0x104] ss:$8 sps:$4 sm:$0xff]  }
 0x487   :  { %3424 = vmatpush1.bf16.msra.mxu1 %v5182_v54  ;;  %v5801_v54 = vld [vmem:[%s5836_s9 + $0x5] ss:$8 sm:$0xf] }
 0x488   :  { %3425 = vmatprep.subr.bf16.mxu1 %v5190_v55  ;;  %v3068_v55 = vrot.slane %v5801_v54, %v5686_v7 }
 0x48b   :  { %3426 = vmatpush1.bf16.msra.mxu1 %v5188_v14  ;;  %v3072_v14 = vrot.slane %v5801_v54, %v5694_v9 }
 0x48c   :  { %3427 = vmatprep.subr.bf16.mxu1 %v5196_v15  ;;  %v3080_v15 = vrot.slane %v5801_v54, %v396_v51 }
 0x48f   :  { %3428 = vmatpush1.bf16.msra.mxu1 %v5194_v17 }
 0x490   :  { %3429 = vmatprep.subr.bf16.mxu1 %v5202_v18 }
 0x493   :  { %3430 = vmatpush1.bf16.msra.mxu1 %v5200_v19 }
 0x494   :  { %3431 = vmatprep.subr.bf16.mxu1 %v5208_v20 }
 0x497   :  { %3432 = vmatpush1.bf16.msra.mxu1 %v5206_v21 }
 0x498   :  { %3433 = vmatprep.subr.bf16.mxu1 %v5214_v22 }
 0x49b   :  { %3434 = vmatpush1.bf16.msra.mxu1 %v5212_v23 }
 0x49c   :  { %3435 = vmatprep.subr.bf16.mxu1 %v5220_v25 }
 0x49f   :  { %3436 = vmatpush1.bf16.msra.mxu1 %v5218_v27 }
 0x4a0   :  { %3892 = vmatprep.subr.bf16.mxu1 %v5226_v11 }
 0x535   :  { %v2989_v32 = vpop.f32.mrb[12].mxu1 }
 0x536   :  { %v2990_v33 = vadd.f32 %v2989_v32, %v2868_v30  ;;  %v2991_v34 = vpop.f32.mrb[13].mxu1  ;;  %v5272_v32 = vld [vmem:[#allocation9 + $0x100] ss:$8 sps:$4 sm:$0xff]  }
 0x537   :  { %v2992_v10 = vadd.f32 %v2991_v34, %v2872_v31  ;;  %v2993_v16 = vpop.f32.mrb[14].mxu1  ;;  %v5277_v34 = vld [vmem:[#allocation9 + $0x114] ss:$8 sps:$4 sm:$0xff]  }
 0x538   :  { %v2994_v35 = vpop.f32.mrb[15].mxu1  ;;  %v2996_v37 = vpack.c.bf16 %v2990_v33, %v2990_v33  ;;  %v5280_v16 = vld [vmem:[#allocation9 + $0x124] ss:$8 sps:$4 sm:$0xff]  }
 0x539   :  { %v2997_v24 = vpack.c.bf16 %v2992_v10, %v2992_v10  ;;  %v5275_v10 = vld [vmem:[#allocation9 + $0x110] ss:$8 sps:$4 sm:$0xff]   ;;  %v5278_v35 = vld [vmem:[#allocation9 + $0x120] ss:$8 sps:$4 sm:$0xff]  }
 0x53b   :  { %3437 = vmatprep.mubr.bf16.mxu1 %v2997_v24  ;;  %3478 = vmatprep.mubr.bf16.mxu0 %v2997_v24  ;;  %v5283_v24 = vld [vmem:[#allocation9 + $0x134] ss:$8 sps:$4 sm:$0xff]  }
 0x53c   :  { %3438 = vmatmul.mubr.bf16.vlgmr.msra.gmra.mrb[16].mxu1 %v2996_v37  ;;  %3479 = vmatmul.mubr.bf16.vlgmr.msra.gmra.mrb[12].mxu0 %v2996_v37  ;;  %v5286_v37 = vld [vmem:[#allocation9 + $0x144] ss:$8 sps:$4 sm:$0xff]  }
 0x53d   :  { %3893 = vmatpush1.bf16.msra.mxu1 %v5224_v36  ;;  %v5281_v36 = vld [vmem:[#allocation9 + $0x130] ss:$8 sps:$4 sm:$0xff]  }
 0x53e   :  { %3894 = vmatprep.subr.bf16.mxu1 %v5229_v38  ;;  %v5284_v38 = vld [vmem:[#allocation9 + $0x140] ss:$8 sps:$4 sm:$0xff]  }
 0x541   :  { %3895 = vmatpush1.bf16.msra.mxu1 %v5227_v39  ;;  %v5289_v39 = vld [vmem:[#allocation9 + $0x154] ss:$8 sps:$4 sm:$0xff]  }
 0x542   :  { %3896 = vmatprep.subr.bf16.mxu1 %v5232_v40  ;;  %v5287_v40 = vld [vmem:[#allocation9 + $0x150] ss:$8 sps:$4 sm:$0xff]  }
 0x545   :  { %3897 = vmatpush1.bf16.msra.mxu1 %v5230_v41  ;;  %v5292_v41 = vld [vmem:[#allocation9 + $0x164] ss:$8 sps:$4 sm:$0xff]  }
 0x546   :  { %3898 = vmatprep.subr.bf16.mxu1 %v5235_v42  ;;  %v5290_v42 = vld [vmem:[#allocation9 + $0x160] ss:$8 sps:$4 sm:$0xff]  }
 0x549   :  { %3899 = vmatpush1.bf16.msra.mxu1 %v5233_v43  ;;  %v5295_v43 = vld [vmem:[#allocation9 + $0x174] ss:$8 sps:$4 sm:$0xff]  }
 0x54a   :  { %3900 = vmatprep.subr.bf16.mxu1 %v5238_v44  ;;  %v5293_v44 = vld [vmem:[#allocation9 + $0x170] ss:$8 sps:$4 sm:$0xff]  }
 0x54d   :  { %3901 = vmatpush1.bf16.msra.mxu1 %v5236_v45  ;;  %v5298_v45 = vld [vmem:[#allocation9 + $0x184] ss:$8 sps:$4 sm:$0xff]  }
 0x54e   :  { %3902 = vmatprep.subr.bf16.mxu1 %v5241_v46  ;;  %v5296_v46 = vld [vmem:[#allocation9 + $0x180] ss:$8 sps:$4 sm:$0xff]  }
 0x551   :  { %3903 = vmatpush1.bf16.msra.mxu1 %v5239_v47  ;;  %v5301_v47 = vld [vmem:[#allocation9 + $0x194] ss:$8 sps:$4 sm:$0xff]  }
 0x552   :  { %3904 = vmatprep.subr.bf16.mxu1 %v5244_v50  ;;  %v5299_v50 = vld [vmem:[#allocation9 + $0x190] ss:$8 sps:$4 sm:$0xff]  }
 0x555   :  { %3905 = vmatpush1.bf16.msra.mxu1 %v5242_v52  ;;  %v5304_v52 = vld [vmem:[#allocation9 + $0x1a4] ss:$8 sps:$4 sm:$0xff]  }
 0x556   :  { %3906 = vmatprep.subr.bf16.mxu1 %v5247_v53  ;;  %v5302_v53 = vld [vmem:[#allocation9 + $0x1a0] ss:$8 sps:$4 sm:$0xff]  }
 0x559   :  { %3907 = vmatpush1.bf16.msra.mxu1 %v5245_v56  ;;  %v5307_v56 = vld [vmem:[#allocation9 + $0x1b4] ss:$8 sps:$4 sm:$0xff]  }
 0x55a   :  { %3908 = vmatprep.subr.bf16.mxu1 %v5250_v57  ;;  %v5305_v57 = vld [vmem:[#allocation9 + $0x1b0] ss:$8 sps:$4 sm:$0xff]  }
 0x55d   :  { %3909 = vmatpush1.bf16.msra.mxu1 %v5248_v58  ;;  %v5310_v58 = vld [vmem:[#allocation9 + $0x1c4] ss:$8 sps:$4 sm:$0xff]  }
 0x55e   :  { %3910 = vmatprep.subr.bf16.mxu1 %v5253_v59  ;;  %v5308_v59 = vld [vmem:[#allocation9 + $0x1c0] ss:$8 sps:$4 sm:$0xff]  }
 0x561   :  { %3911 = vmatpush1.bf16.msra.mxu1 %v5251_v60  ;;  %v5313_v60 = vld [vmem:[#allocation9 + $0x1d4] ss:$8 sps:$4 sm:$0xff]  }
 0x562   :  { %3912 = vmatprep.subr.bf16.mxu1 %v5256_v61  ;;  %v5311_v61 = vld [vmem:[#allocation9 + $0x1d0] ss:$8 sps:$4 sm:$0xff]  }
 0x565   :  { %3913 = vmatpush1.bf16.msra.mxu1 %v5254_v62  ;;  %v3076_v62 = vrot.slane %v5801_v54, %v392_v49  ;;  %v3565_v49 = vrot.slane %v4435_v6, %v5686_v7 }
 0x566   :  { %3914 = vmatprep.subr.bf16.mxu1 %v5259_v63  ;;  %v5316_v63 = vld [vmem:[#allocation9 + $0x1e4] ss:$8 sps:$4 sm:$0xff]  }
 0x569   :  { %3915 = vmatpush1.bf16.msra.mxu1 %v5257_v0  ;;  %v5314_v0 = vld [vmem:[#allocation9 + $0x1e0] ss:$8 sps:$4 sm:$0xff]  }
 0x56a   :  { %3916 = vmatprep.subr.bf16.mxu1 %v5262_v1 }
 0x56d   :  { %3917 = vmatpush1.bf16.msra.mxu1 %v5260_v2  ;;  %v5319_v2 = vld [vmem:[#allocation9 + $0x1f4] ss:$8 sps:$4 sm:$0xff]  }
 0x56e   :  { %3918 = vmatprep.subr.bf16.mxu1 %v5265_v48  ;;  %v5317_v48 = vld [vmem:[#allocation9 + $0x1f0] ss:$8 sps:$4 sm:$0xff]  }
 0x571   :  { %3919 = vmatpush1.bf16.msra.mxu1 %v5263_v3 }
 0x572   :  { %3920 = vmatprep.subr.bf16.mxu1 %v5268_v4 }
 0x575   :  { %3921 = vmatpush1.bf16.msra.mxu1 %v5266_v5  ;;  %v3569_v5 = vrot.slane %v4435_v6, %v5694_v9 }
 0x576   :  { %3922 = vmatprep.subr.bf16.mxu1 %v5271_v8 }
 0x579   :  { %3923 = vmatpush1.bf16.msra.mxu1 %v5269_v12 }
 0x57a   :  { %3933 = vmatprep.subr.bf16.mxu1 %v5274_v13 }
 0x60f   :  { %v3439_v17 = vpop.f32.mrb[16].mxu1  ;;  %v5810_v18 = vpop.f32.mrb[12].mxu0 }
 0x610   :  { %v3440_v19 = vadd.f32 %v3439_v17, %v3068_v55  ;;  %v3441_v20 = vpop.f32.mrb[17].mxu1  ;;  %v3482_v21 = vpop.f32.mrb[13].mxu0  ;;  %v3481_v1 = vadd.f32 %v5810_v18, %v3076_v62 }
 0x611   :  { %v3442_v22 = vadd.f32 %v3441_v20, %v3072_v14  ;;  %v3483_v23 = vadd.f32 %v3482_v21, %v3080_v15  ;;  %v3443_v25 = vpop.f32.mrb[18].mxu1  ;;  %v3484_v26 = vpop.f32.mrb[14].mxu0 }
 0x612   :  { %v3487_v27 = vmax.f32 %v3440_v19, 0.0  ;;  %v3444_v28 = vpop.f32.mrb[19].mxu1  ;;  %v3485_v11 = vpop.f32.mrb[15].mxu0  ;;  %v3489_v3 = vmax.f32 %v3481_v1, 0.0 }
 0x613   :  { %v3488_v29 = vmax.f32 %v3442_v22, 0.0  ;;  %v3490_v30 = vmax.f32 %v3483_v23, 0.0 }
 0x614   :  { %v3491_v33 = vpack.c.bf16 %v3487_v27, %v3487_v27  ;;  %v3493_v4 = vpack.c.bf16 %v3489_v3, %v3489_v3 }
 0x615   :  { %v3492_v31 = vpack.c.bf16 %v3488_v29, %v3488_v29  ;;  %v3494_v51 = vpack.c.bf16 %v3490_v30, %v3490_v30 }
 0x617   :  { %3924 = vmatprep.mubr.bf16.mxu1 %v3492_v31 }
 0x618   :  { %3925 = vmatmul.mubr.bf16.vlgmr.msra.gmra.mrb[20].mxu1 %v3491_v33 }
 0x619   :  { %3934 = vmatpush1.bf16.msra.mxu1 %v5272_v32  ;;  %3965 = vmatprep.mubr.bf16.mxu1 %v3494_v51 }
 0x61a   :  { %3935 = vmatprep.subr.bf16.mxu1 %v5277_v34 }
 0x61d   :  { %3936 = vmatpush1.bf16.msra.mxu1 %v5275_v10 }
 0x61e   :  { %3937 = vmatprep.subr.bf16.mxu1 %v5280_v16 }
 0x621   :  { %3938 = vmatpush1.bf16.msra.mxu1 %v5278_v35 }
 0x622   :  { %3939 = vmatprep.subr.bf16.mxu1 %v5283_v24 }
 0x625   :  { %3940 = vmatpush1.bf16.msra.mxu1 %v5281_v36 }
 0x626   :  { %3941 = vmatprep.subr.bf16.mxu1 %v5286_v37 }
 0x629   :  { %3942 = vmatpush1.bf16.msra.mxu1 %v5284_v38 }
 0x62a   :  { %3943 = vmatprep.subr.bf16.mxu1 %v5289_v39 }
 0x62d   :  { %3944 = vmatpush1.bf16.msra.mxu1 %v5287_v40 }
 0x62e   :  { %3945 = vmatprep.subr.bf16.mxu1 %v5292_v41 }
 0x631   :  { %3946 = vmatpush1.bf16.msra.mxu1 %v5290_v42 }
 0x632   :  { %3947 = vmatprep.subr.bf16.mxu1 %v5295_v43 }
 0x635   :  { %3948 = vmatpush1.bf16.msra.mxu1 %v5293_v44 }
 0x636   :  { %3949 = vmatprep.subr.bf16.mxu1 %v5298_v45 }
 0x639   :  { %3950 = vmatpush1.bf16.msra.mxu1 %v5296_v46 }
 0x63a   :  { %3951 = vmatprep.subr.bf16.mxu1 %v5301_v47 }
 0x63d   :  { %3952 = vmatpush1.bf16.msra.mxu1 %v5299_v50 }
 0x63e   :  { %3953 = vmatprep.subr.bf16.mxu1 %v5304_v52 }
 0x641   :  { %3954 = vmatpush1.bf16.msra.mxu1 %v5302_v53 }
 0x642   :  { %3955 = vmatprep.subr.bf16.mxu1 %v5307_v56 }
 0x645   :  { %3956 = vmatpush1.bf16.msra.mxu1 %v5305_v57 }
 0x646   :  { %3957 = vmatprep.subr.bf16.mxu1 %v5310_v58 }
 0x649   :  { %3958 = vmatpush1.bf16.msra.mxu1 %v5308_v59 }
 0x64a   :  { %3959 = vmatprep.subr.bf16.mxu1 %v5313_v60 }
 0x64d   :  { %3960 = vmatpush1.bf16.msra.mxu1 %v5311_v61 }
 0x64e   :  { %3961 = vmatprep.subr.bf16.mxu1 %v5316_v63 }
 0x651   :  { %3962 = vmatpush1.bf16.msra.mxu1 %v5314_v0 }
 0x652   :  { %3963 = vmatprep.subr.bf16.mxu1 %v5319_v2 }
 0x655   :  { %3964 = vmatpush1.bf16.msra.mxu1 %v5317_v48 }
 0x658   :  { %3966 = vmatmul.mubr.bf16.vlgmr.msra.gmra.mrb[20].mxu1 %v3493_v4 }
 0x72b   :  { %v3967_v8 = vpop.f32.mrb[20].mxu1 }
 0x72c   :  { %v4552_v12 = vadd.f32 %v3967_v8, %v3565_v49  ;;  %v3969_v13 = vpop.f32.mrb[21].mxu1 }
 0x72d   :  { %v4553_v54 = vadd.f32 %v3969_v13, %v3569_v5  ;;  %v3971_v55 = vpop.f32.mrb[22].mxu1 }
 0x72e   :  { %5322 = vtanh.f32 %v4552_v12  ;;  %v3972_v14 = vpop.f32.mrb[23].mxu1 }
 0x72f   :  { %5324 = vtanh.f32 %v4553_v54 }
 0x738   :  { %v5323_v15 = vpop.eup %5322 }
 0x739   :  { %v5325_v17 = vpop.eup %5324  ;;  %3976 = vst [vmem:[%s5837_s10] sm:$0xff] %v5323_v15 }
 0x73a   :  { %3977 = vst [vmem:[%s5837_s10 + $0x8] sm:$0xff] %v5325_v17 }
 0x73b   :  { %3997 = vsyncpa [#allocation3], 1 }
 0x73c   :  { %3998 = vsyncpa [#allocation5], 1 }
 0x73d   :  { %3999 = vsyncpa [#allocation8], 1 }

</bundles_post_ra>
